<compile_context>
chip_gen: v7x
topology: tpu7x:2x2x1
jax: 0.10.0
libtpu: 0.0.40
codegen_flags: <defaults>
</compile_context>

<pallas_src>
import functools

import jax
import jax.numpy as jnp
from jax.experimental import pallas as pl
from jax.experimental.pallas import tpu as pltpu

BN_EPS = 1e-5


def _fold_bn(sum_ref, sq_ref, w_ref, b_ref, gamma_ref, beta_ref,
             w_eff_ref, b_eff_ref, n_rows, dim_out):
    """Collapse per-lane (slab) moments to per-column stats, fold BN into
    effective weights:  o = x @ W_eff + b_eff  ==  BN(x @ W + b)."""
    lanes = sum_ref.shape[-1]
    # collapse[i, j] = 1 iff slab lanes i and j map to the same output column.
    ii = jax.lax.broadcasted_iota(jnp.int32, (lanes, lanes), 0) % dim_out
    jj = jax.lax.broadcasted_iota(jnp.int32, (lanes, lanes), 1) % dim_out
    collapse = (ii == jj).astype(jnp.float32)
    tot_sum = jnp.dot(sum_ref[...], collapse, preferred_element_type=jnp.float32)
    tot_sq = jnp.dot(sq_ref[...], collapse, preferred_element_type=jnp.float32)
    inv_n = 1.0 / n_rows
    mean_g = tot_sum * inv_n                       # mean of x @ W (bias excluded)
    var = jnp.maximum(tot_sq * inv_n - mean_g * mean_g, 0.0)   # clamp cancellation
    scale = gamma_ref[...] * jax.lax.rsqrt(var + BN_EPS)
    shift = beta_ref[...] - (mean_g + b_ref[...]) * scale      # mean_h = mean_g + b
    w_eff_ref[...] = w_ref[...] * scale
    b_eff_ref[...] = b_ref[...] * scale + shift


def _feature_encoder_kernel(
        xn_ref, wn_ref, bn_ref, gn_ref, btn_ref,
        xe_ref, we_ref, be_ref, ge_ref, bte_ref,
        on_ref, oe_ref,
        nsum_ref, nsq_ref, esum_ref, esq_ref,
        wn_eff_ref, bn_eff_ref, we_eff_ref, be_eff_ref,
        *, num_nodes, num_edges, dim_out):
    p = pl.program_id(0)   # 0 = stats pass, 1 = normalize pass
    t = pl.program_id(1)   # row tile

    @pl.when((p == 0) & (t == 0))
    def _():
        nsum_ref[...] = jnp.zeros_like(nsum_ref)
        nsq_ref[...] = jnp.zeros_like(nsq_ref)
        esum_ref[...] = jnp.zeros_like(esum_ref)
        esq_ref[...] = jnp.zeros_like(esq_ref)

    @pl.when(p == 0)
    def _():
        # Bias-free moments: zero-padded rows contribute exactly nothing.
        # No output store in this pass (writeback eliminated).
        gn = jnp.dot(xn_ref[...], wn_ref[...], preferred_element_type=jnp.float32)
        nsum_ref[...] += jnp.sum(gn, axis=0, keepdims=True)
        nsq_ref[...] += jnp.sum(gn * gn, axis=0, keepdims=True)
        ge = jnp.dot(xe_ref[...], we_ref[...], preferred_element_type=jnp.float32)
        esum_ref[...] += jnp.sum(ge, axis=0, keepdims=True)
        esq_ref[...] += jnp.sum(ge * ge, axis=0, keepdims=True)

    @pl.when((p == 1) & (t == 0))
    def _():
        _fold_bn(nsum_ref, nsq_ref, wn_ref, bn_ref, gn_ref, btn_ref,
                 wn_eff_ref, bn_eff_ref, num_nodes, dim_out)
        _fold_bn(esum_ref, esq_ref, we_ref, be_ref, ge_ref, bte_ref,
                 we_eff_ref, be_eff_ref, num_edges, dim_out)

    @pl.when(p == 1)
    def _():
        on_ref[...] = (jnp.dot(xn_ref[...], wn_eff_ref[...],
                               preferred_element_type=jnp.float32)
                       + bn_eff_ref[...]).astype(on_ref.dtype)
        oe_ref[...] = (jnp.dot(xe_ref[...], we_eff_ref[...],
                               preferred_element_type=jnp.float32)
                       + be_eff_ref[...]).astype(oe_ref.dtype)


def _round_up(a, m):
    return ((a + m - 1) // m) * m


def _pack_factor(dim_out):
    # Pack P rows per slab row so that P * dim_out is lane-dense (128 lanes).
    return 128 // dim_out if (dim_out < 128 and 128 % dim_out == 0) else 1


def feature_encoder_forward(params, batch, *, max_rows_per_tile=8192):
    """batch: dict with 'x' (num_nodes, node_dim_in) and
    'edge_attr' (num_edges, edge_dim_in). Returns updated dict."""
    x = batch["x"]
    e = batch["edge_attr"]
    num_nodes, node_din = x.shape
    num_edges, edge_din = e.shape
    dim_out = params.node_w.shape[1]

    P = _pack_factor(dim_out)
    lane = P * dim_out
    row_align = 8 * P

    # cdiv-style tiling: common tile count T, per-path row tiles rounded to the
    # pack/sublane alignment, rows zero-padded up to T * tile.
    T = max(1, pl.cdiv(num_nodes, max_rows_per_tile),
            pl.cdiv(num_edges, max_rows_per_tile))
    tr_n = _round_up(max(1, pl.cdiv(num_nodes, T)), row_align)
    tr_e = _round_up(max(1, pl.cdiv(num_edges, T)), row_align)
    n_pad = T * tr_n
    e_pad = T * tr_e

    xp = x if n_pad == num_nodes else jnp.pad(x, ((0, n_pad - num_nodes), (0, 0)))
    ep = e if e_pad == num_edges else jnp.pad(e, ((0, e_pad - num_edges), (0, 0)))

    # Lane-dense slab views (free row-major reshapes in HBM).
    x_slab = xp.reshape(n_pad // P, P * node_din)
    e_slab = ep.reshape(e_pad // P, P * edge_din)

    # Block-diagonal weights / P-tiled per-column params matching the slab view.
    eye_p = jnp.eye(P, dtype=params.node_w.dtype)
    wn_blk = jnp.kron(eye_p, params.node_w)            # (P*Din_n, P*Dout)
    we_blk = jnp.kron(eye_p, params.edge_w)            # (P*Din_e, P*Dout)
    bn_slab = jnp.tile(params.node_b, (1, P))
    gn_slab = jnp.tile(params.node_gamma, (1, P))
    btn_slab = jnp.tile(params.node_beta, (1, P))
    be_slab = jnp.tile(params.edge_b, (1, P))
    ge_slab = jnp.tile(params.edge_gamma, (1, P))
    bte_slab = jnp.tile(params.edge_beta, (1, P))

    kernel = functools.partial(_feature_encoder_kernel,
                               num_nodes=num_nodes, num_edges=num_edges,
                               dim_out=dim_out)

    tile_map = lambda p, t: (t, 0)       # row-tiled slabs (read in both passes)
    full_map = lambda p, t: (0, 0)       # weights / per-column params (resident)
    out_map = lambda p, t: (p * t, 0)    # pinned at block 0 during the stats pass

    on_slab, oe_slab = pl.pallas_call(
        kernel,
        out_shape=(jax.ShapeDtypeStruct((n_pad // P, lane), x.dtype),
                   jax.ShapeDtypeStruct((e_pad // P, lane), e.dtype)),
        grid=(2, T),
        in_specs=[
            pl.BlockSpec((tr_n // P, P * node_din), tile_map),
            pl.BlockSpec((P * node_din, lane), full_map),
            pl.BlockSpec((1, lane), full_map),
            pl.BlockSpec((1, lane), full_map),
            pl.BlockSpec((1, lane), full_map),
            pl.BlockSpec((tr_e // P, P * edge_din), tile_map),
            pl.BlockSpec((P * edge_din, lane), full_map),
            pl.BlockSpec((1, lane), full_map),
            pl.BlockSpec((1, lane), full_map),
            pl.BlockSpec((1, lane), full_map),
        ],
        out_specs=(
            pl.BlockSpec((tr_n // P, lane), out_map),
            pl.BlockSpec((tr_e // P, lane), out_map),
        ),
        scratch_shapes=[
            pltpu.VMEM((1, lane), jnp.float32),              # node sum
            pltpu.VMEM((1, lane), jnp.float32),              # node sumsq
            pltpu.VMEM((1, lane), jnp.float32),              # edge sum
            pltpu.VMEM((1, lane), jnp.float32),              # edge sumsq
            pltpu.VMEM((P * node_din, lane), jnp.float32),   # node W_eff
            pltpu.VMEM((1, lane), jnp.float32),              # node b_eff
            pltpu.VMEM((P * edge_din, lane), jnp.float32),   # edge W_eff
            pltpu.VMEM((1, lane), jnp.float32),              # edge b_eff
        ],
        compiler_params=pltpu.CompilerParams(
            dimension_semantics=("arbitrary", "arbitrary"),
            vmem_limit_bytes=32 * 1024 * 1024),
    )(x_slab, wn_blk, bn_slab, gn_slab, btn_slab,
      e_slab, we_blk, be_slab, ge_slab, bte_slab)

    out = dict(batch)
    out["x"] = on_slab.reshape(n_pad, dim_out)[:num_nodes]
    out["edge_attr"] = oe_slab.reshape(e_pad, dim_out)[:num_edges]
    return out


class FeatureEncoderParams:
    """Deterministic synthetic parameters mirroring FeatureEncoder.__init__."""

    def __init__(self, key, node_dim_in, edge_dim_in, dim_inner):
        k = jax.random.split(key, 4)
        s_node = 1.0 / jnp.sqrt(jnp.float32(node_dim_in))
        s_edge = 1.0 / jnp.sqrt(jnp.float32(edge_dim_in))
        # node_encoder: Linear(node_dim_in, dim_inner)
        self.node_w = jax.random.uniform(k[0], (node_dim_in, dim_inner),
                                         jnp.float32, -s_node, s_node)
        self.node_b = jax.random.uniform(k[1], (1, dim_inner),
                                         jnp.float32, -s_node, s_node)
        # node_encoder_bn: BatchNorm1d(dim_inner) affine params
        self.node_gamma = jnp.ones((1, dim_inner), jnp.float32)
        self.node_beta = jnp.zeros((1, dim_inner), jnp.float32)
        # edge_encoder: Linear(edge_dim_in, dim_inner)  (dim_edge == dim_inner)
        self.edge_w = jax.random.uniform(k[2], (edge_dim_in, dim_inner),
                                         jnp.float32, -s_edge, s_edge)
        self.edge_b = jax.random.uniform(k[3], (1, dim_inner),
                                         jnp.float32, -s_edge, s_edge)
        # edge_encoder_bn: BatchNorm1d(dim_inner)
        self.edge_gamma = jnp.ones((1, dim_inner), jnp.float32)
        self.edge_beta = jnp.zeros((1, dim_inner), jnp.float32)


def _reference(params, batch):
    def lin_bn(x, w, b, g, bt):
        h = x @ w + b
        mean = h.mean(axis=0, keepdims=True)
        var = ((h - mean) ** 2).mean(axis=0, keepdims=True)
        return (h - mean) / jnp.sqrt(var + BN_EPS) * g + bt
    return {
        "x": lin_bn(batch["x"], params.node_w, params.node_b,
                    params.node_gamma, params.node_beta),
        "edge_attr": lin_bn(batch["edge_attr"], params.edge_w, params.edge_b,
                            params.edge_gamma, params.edge_beta),
    }


if __name__ == "__main__":
    key = jax.random.PRNGKey(0)
    k_param, k_x, k_e = jax.random.split(key, 3)

    num_nodes, node_dim_in = 32, 16   # small graph, node feature dim 16
    num_edges, edge_dim_in = 64, 8    # edge feature dim 8
    dim_inner = 32                    # cfg.gnn.dim_inner

    params = FeatureEncoderParams(k_param, node_dim_in, edge_dim_in, dim_inner)
    batch = {
        "x": jax.random.normal(k_x, (num_nodes, node_dim_in), jnp.float32),
        "edge_attr": jax.random.normal(k_e, (num_edges, edge_dim_in),
                                       jnp.float32),
    }
    ref = _reference(params, batch)

    # 1) Force multi-tile streaming (T=4 with row padding) to exercise the
    #    two-pass path, pinned pass-0 output block, and zero-pad handling.
    out = feature_encoder_forward(params, batch, max_rows_per_tile=16)
    jax.block_until_ready(out["x"])
    jax.block_until_ready(out["edge_attr"])
    assert jnp.allclose(out["x"], ref["x"], atol=1e-4, rtol=1e-4)
    assert jnp.allclose(out["edge_attr"], ref["edge_attr"], atol=1e-4, rtol=1e-4)

    # 2) Default (single-tile) path.
    out2 = feature_encoder_forward(params, batch)
    jax.block_until_ready(out2["x"])
    jax.block_until_ready(out2["edge_attr"])
    assert jnp.allclose(out2["x"], ref["x"], atol=1e-4, rtol=1e-4)
    assert jnp.allclose(out2["edge_attr"], ref["edge_attr"], atol=1e-4, rtol=1e-4)

    print("KERNEL_OK")
</pallas_src>

<mosaic_0001>
module attributes {stable_mosaic.version = 11 : i64} {
  func.func @_feature_encoder_kernel(%arg0: i32, %arg1: i32, %arg2: memref<8x64xf32, #tpu.memory_space<vmem>>, %arg3: memref<64x128xf32, #tpu.memory_space<vmem>>, %arg4: memref<1x128xf32, #tpu.memory_space<vmem>>, %arg5: memref<1x128xf32, #tpu.memory_space<vmem>>, %arg6: memref<1x128xf32, #tpu.memory_space<vmem>>, %arg7: memref<8x32xf32, #tpu.memory_space<vmem>>, %arg8: memref<32x128xf32, #tpu.memory_space<vmem>>, %arg9: memref<1x128xf32, #tpu.memory_space<vmem>>, %arg10: memref<1x128xf32, #tpu.memory_space<vmem>>, %arg11: memref<1x128xf32, #tpu.memory_space<vmem>>, %arg12: memref<8x128xf32, #tpu.memory_space<vmem>>, %arg13: memref<8x128xf32, #tpu.memory_space<vmem>>, %arg14: memref<1x128xf32, #tpu.memory_space<vmem>>, %arg15: memref<1x128xf32, #tpu.memory_space<vmem>>, %arg16: memref<1x128xf32, #tpu.memory_space<vmem>>, %arg17: memref<1x128xf32, #tpu.memory_space<vmem>>, %arg18: memref<64x128xf32, #tpu.memory_space<vmem>>, %arg19: memref<1x128xf32, #tpu.memory_space<vmem>>, %arg20: memref<32x128xf32, #tpu.memory_space<vmem>>, %arg21: memref<1x128xf32, #tpu.memory_space<vmem>>) attributes {dimension_semantics = [#tpu.dimension_semantics<arbitrary>, #tpu.dimension_semantics<arbitrary>], iteration_bounds = array<i64: 2, 4>, scalar_prefetch = 0 : i64, scratch_operands = 8 : i64, tpu.core_type = #tpu.core_type<tc>, window_params = [{transform_indices = @transform_0, window_bounds = array<i64: 8, 64>}, {pipeline_mode = #tpu.pipeline_mode<synchronous>, transform_indices = @transform_1, window_bounds = array<i64: 64, 128>}, {pipeline_mode = #tpu.pipeline_mode<synchronous>, transform_indices = @transform_2, window_bounds = array<i64: 1, 128>}, {pipeline_mode = #tpu.pipeline_mode<synchronous>, transform_indices = @transform_3, window_bounds = array<i64: 1, 128>}, {pipeline_mode = #tpu.pipeline_mode<synchronous>, transform_indices = @transform_4, window_bounds = array<i64: 1, 128>}, {transform_indices = @transform_5, window_bounds = array<i64: 8, 32>}, {pipeline_mode = #tpu.pipeline_mode<synchronous>, transform_indices = @transform_6, window_bounds = array<i64: 32, 128>}, {pipeline_mode = #tpu.pipeline_mode<synchronous>, transform_indices = @transform_7, window_bounds = array<i64: 1, 128>}, {pipeline_mode = #tpu.pipeline_mode<synchronous>, transform_indices = @transform_8, window_bounds = array<i64: 1, 128>}, {pipeline_mode = #tpu.pipeline_mode<synchronous>, transform_indices = @transform_9, window_bounds = array<i64: 1, 128>}, {transform_indices = @transform_10, window_bounds = array<i64: 8, 128>}, {transform_indices = @transform_11, window_bounds = array<i64: 8, 128>}]} {
    %c0_i32 = arith.constant 0 : i32
    %0 = arith.cmpi eq, %arg0, %c0_i32 : i32
    %c0_i32_0 = arith.constant 0 : i32
    %1 = arith.cmpi eq, %arg1, %c0_i32_0 : i32
    %2 = arith.andi %0, %1 : i1
    %3 = arith.extui %2 : i1 to i32
    %c0_i32_1 = arith.constant 0 : i32
    %4 = arith.cmpi ne, %3, %c0_i32_1 : i32
    scf.if %4 {
      %cst = arith.constant 0.000000e+00 : f32
      %16 = vector.broadcast %cst : f32 to vector<1x128xf32>
      %c0 = arith.constant 0 : index
      %c0_8 = arith.constant 0 : index
      %17 = vector.load %arg14[%c0, %c0_8] : memref<1x128xf32, #tpu.memory_space<vmem>>, vector<1x128xf32>
      tpu.vector_store %arg14[%c0, %c0_8], %16 {strides = array<i32>} : memref<1x128xf32, #tpu.memory_space<vmem>>, vector<1x128xf32>,
      %cst_9 = arith.constant 0.000000e+00 : f32
      %18 = vector.broadcast %cst_9 : f32 to vector<1x128xf32>
      %c0_10 = arith.constant 0 : index
      %c0_11 = arith.constant 0 : index
      %19 = vector.load %arg15[%c0_10, %c0_11] : memref<1x128xf32, #tpu.memory_space<vmem>>, vector<1x128xf32>
      tpu.vector_store %arg15[%c0_10, %c0_11], %18 {strides = array<i32>} : memref<1x128xf32, #tpu.memory_space<vmem>>, vector<1x128xf32>,
      %cst_12 = arith.constant 0.000000e+00 : f32
      %20 = vector.broadcast %cst_12 : f32 to vector<1x128xf32>
      %c0_13 = arith.constant 0 : index
      %c0_14 = arith.constant 0 : index
      %21 = vector.load %arg16[%c0_13, %c0_14] : memref<1x128xf32, #tpu.memory_space<vmem>>, vector<1x128xf32>
      tpu.vector_store %arg16[%c0_13, %c0_14], %20 {strides = array<i32>} : memref<1x128xf32, #tpu.memory_space<vmem>>, vector<1x128xf32>,
      %cst_15 = arith.constant 0.000000e+00 : f32
      %22 = vector.broadcast %cst_15 : f32 to vector<1x128xf32>
      %c0_16 = arith.constant 0 : index
      %c0_17 = arith.constant 0 : index
      %23 = vector.load %arg17[%c0_16, %c0_17] : memref<1x128xf32, #tpu.memory_space<vmem>>, vector<1x128xf32>
      tpu.vector_store %arg17[%c0_16, %c0_17], %22 {strides = array<i32>} : memref<1x128xf32, #tpu.memory_space<vmem>>, vector<1x128xf32>,
    } else {
    }
    %c0_i32_2 = arith.constant 0 : i32
    %5 = arith.cmpi eq, %arg0, %c0_i32_2 : i32
    %6 = arith.extui %5 : i1 to i32
    %c0_i32_3 = arith.constant 0 : i32
    %7 = arith.cmpi ne, %6, %c0_i32_3 : i32
    scf.if %7 {
      %c0 = arith.constant 0 : index
      %c0_8 = arith.constant 0 : index
      %16 = vector.load %arg2[%c0, %c0_8] : memref<8x64xf32, #tpu.memory_space<vmem>>, vector<8x64xf32>
      %c0_9 = arith.constant 0 : index
      %c0_10 = arith.constant 0 : index
      %17 = vector.load %arg3[%c0_9, %c0_10] : memref<64x128xf32, #tpu.memory_space<vmem>>, vector<64x128xf32>
      %cst = arith.constant dense<0.000000e+00> : vector<8x128xf32>
      %18 = tpu.matmul %16, %17, %cst {dimension_numbers = #tpu.dot_dimension_numbers<[1], [0], [0], [1], [0, 0, 1, 1], [], []>} : vector<8x64xf32>, vector<64x128xf32>, vector<8x128xf32> -> vector<8x128xf32>
      %c0_11 = arith.constant 0 : index
      %c0_12 = arith.constant 0 : index
      %19 = vector.load %arg14[%c0_11, %c0_12] : memref<1x128xf32, #tpu.memory_space<vmem>>, vector<1x128xf32>
      %cst_13 = arith.constant dense<0.000000e+00> : vector<128xf32>
      %20 = vector.multi_reduction <add>, %18, %cst_13 [0] : vector<8x128xf32> to vector<128xf32>
      %21 = vector.shape_cast %20 : vector<128xf32> to vector<1x128xf32>
      %22 = arith.addf %19, %21 : vector<1x128xf32>
      %c0_14 = arith.constant 0 : index
      %c0_15 = arith.constant 0 : index
      %23 = vector.load %arg14[%c0_14, %c0_15] : memref<1x128xf32, #tpu.memory_space<vmem>>, vector<1x128xf32>
      tpu.vector_store %arg14[%c0_14, %c0_15], %22 {strides = array<i32>} : memref<1x128xf32, #tpu.memory_space<vmem>>, vector<1x128xf32>,
      %c0_16 = arith.constant 0 : index
      %c0_17 = arith.constant 0 : index
      %24 = vector.load %arg15[%c0_16, %c0_17] : memref<1x128xf32, #tpu.memory_space<vmem>>, vector<1x128xf32>
      %25 = arith.mulf %18, %18 : vector<8x128xf32>
      %cst_18 = arith.constant dense<0.000000e+00> : vector<128xf32>
      %26 = vector.multi_reduction <add>, %25, %cst_18 [0] : vector<8x128xf32> to vector<128xf32>
      %27 = vector.shape_cast %26 : vector<128xf32> to vector<1x128xf32>
      %28 = arith.addf %24, %27 : vector<1x128xf32>
      %c0_19 = arith.constant 0 : index
      %c0_20 = arith.constant 0 : index
      %29 = vector.load %arg15[%c0_19, %c0_20] : memref<1x128xf32, #tpu.memory_space<vmem>>, vector<1x128xf32>
      tpu.vector_store %arg15[%c0_19, %c0_20], %28 {strides = array<i32>} : memref<1x128xf32, #tpu.memory_space<vmem>>, vector<1x128xf32>,
      %c0_21 = arith.constant 0 : index
      %c0_22 = arith.constant 0 : index
      %30 = vector.load %arg7[%c0_21, %c0_22] : memref<8x32xf32, #tpu.memory_space<vmem>>, vector<8x32xf32>
      %c0_23 = arith.constant 0 : index
      %c0_24 = arith.constant 0 : index
      %31 = vector.load %arg8[%c0_23, %c0_24] : memref<32x128xf32, #tpu.memory_space<vmem>>, vector<32x128xf32>
      %cst_25 = arith.constant dense<0.000000e+00> : vector<8x128xf32>
      %32 = tpu.matmul %30, %31, %cst_25 {dimension_numbers = #tpu.dot_dimension_numbers<[1], [0], [0], [1], [0, 0, 1, 1], [], []>} : vector<8x32xf32>, vector<32x128xf32>, vector<8x128xf32> -> vector<8x128xf32>
      %c0_26 = arith.constant 0 : index
      %c0_27 = arith.constant 0 : index
      %33 = vector.load %arg16[%c0_26, %c0_27] : memref<1x128xf32, #tpu.memory_space<vmem>>, vector<1x128xf32>
      %cst_28 = arith.constant dense<0.000000e+00> : vector<128xf32>
      %34 = vector.multi_reduction <add>, %32, %cst_28 [0] : vector<8x128xf32> to vector<128xf32>
      %35 = vector.shape_cast %34 : vector<128xf32> to vector<1x128xf32>
      %36 = arith.addf %33, %35 : vector<1x128xf32>
      %c0_29 = arith.constant 0 : index
      %c0_30 = arith.constant 0 : index
      %37 = vector.load %arg16[%c0_29, %c0_30] : memref<1x128xf32, #tpu.memory_space<vmem>>, vector<1x128xf32>
      tpu.vector_store %arg16[%c0_29, %c0_30], %36 {strides = array<i32>} : memref<1x128xf32, #tpu.memory_space<vmem>>, vector<1x128xf32>,
      %c0_31 = arith.constant 0 : index
      %c0_32 = arith.constant 0 : index
      %38 = vector.load %arg17[%c0_31, %c0_32] : memref<1x128xf32, #tpu.memory_space<vmem>>, vector<1x128xf32>
      %39 = arith.mulf %32, %32 : vector<8x128xf32>
      %cst_33 = arith.constant dense<0.000000e+00> : vector<128xf32>
      %40 = vector.multi_reduction <add>, %39, %cst_33 [0] : vector<8x128xf32> to vector<128xf32>
      %41 = vector.shape_cast %40 : vector<128xf32> to vector<1x128xf32>
      %42 = arith.addf %38, %41 : vector<1x128xf32>
      %c0_34 = arith.constant 0 : index
      %c0_35 = arith.constant 0 : index
      %43 = vector.load %arg17[%c0_34, %c0_35] : memref<1x128xf32, #tpu.memory_space<vmem>>, vector<1x128xf32>
      tpu.vector_store %arg17[%c0_34, %c0_35], %42 {strides = array<i32>} : memref<1x128xf32, #tpu.memory_space<vmem>>, vector<1x128xf32>,
    } else {
    }
    %c1_i32 = arith.constant 1 : i32
    %8 = arith.cmpi eq, %arg0, %c1_i32 : i32
    %c0_i32_4 = arith.constant 0 : i32
    %9 = arith.cmpi eq, %arg1, %c0_i32_4 : i32
    %10 = arith.andi %8, %9 : i1
    %11 = arith.extui %10 : i1 to i32
    %c0_i32_5 = arith.constant 0 : i32
    %12 = arith.cmpi ne, %11, %c0_i32_5 : i32
    scf.if %12 {
      %16 = tpu.iota {dimensions = array<i32: 0>} : vector<128x128xi32>
      %c32_i32 = arith.constant 32 : i32
      %c0_i32_8 = arith.constant 0 : i32
      %17 = arith.cmpi eq, %c32_i32, %c0_i32_8 : i32
      %c1_i32_9 = arith.constant 1 : i32
      %18 = arith.select %17, %c1_i32_9, %c32_i32 : i32
      %19 = vector.broadcast %18 : i32 to vector<128x128xi32>
      %20 = arith.remsi %16, %19 : vector<128x128xi32>
      %c0_i32_10 = arith.constant 0 : i32
      %21 = vector.broadcast %c0_i32_10 : i32 to vector<128x128xi32>
      %22 = arith.cmpi ne, %20, %21 : vector<128x128xi32>
      %c0_i32_11 = arith.constant 0 : i32
      %23 = vector.broadcast %c0_i32_11 : i32 to vector<128x128xi32>
      %24 = arith.cmpi slt, %20, %23 : vector<128x128xi32>
      %c0_i32_12 = arith.constant 0 : i32
      %25 = arith.cmpi slt, %18, %c0_i32_12 : i32
      %26 = vector.broadcast %25 : i1 to vector<128x128xi1>
      %27 = vector.broadcast %26 : vector<128x128xi1> to vector<128x128xi1>
      %28 = arith.xori %24, %27 : vector<128x128xi1>
      %29 = arith.andi %28, %22 : vector<128x128xi1>
      %30 = vector.broadcast %18 : i32 to vector<128x128xi32>
      %31 = arith.addi %20, %30 : vector<128x128xi32>
      %32 = arith.select %29, %31, %20 : vector<128x128xi1>, vector<128x128xi32>
      %33 = tpu.iota {dimensions = array<i32: 1>} : vector<128x128xi32>
      %c32_i32_13 = arith.constant 32 : i32
      %c0_i32_14 = arith.constant 0 : i32
      %34 = arith.cmpi eq, %c32_i32_13, %c0_i32_14 : i32
      %c1_i32_15 = arith.constant 1 : i32
      %35 = arith.select %34, %c1_i32_15, %c32_i32_13 : i32
      %36 = vector.broadcast %35 : i32 to vector<128x128xi32>
      %37 = arith.remsi %33, %36 : vector<128x128xi32>
      %c0_i32_16 = arith.constant 0 : i32
      %38 = vector.broadcast %c0_i32_16 : i32 to vector<128x128xi32>
      %39 = arith.cmpi ne, %37, %38 : vector<128x128xi32>
      %c0_i32_17 = arith.constant 0 : i32
      %40 = vector.broadcast %c0_i32_17 : i32 to vector<128x128xi32>
      %41 = arith.cmpi slt, %37, %40 : vector<128x128xi32>
      %c0_i32_18 = arith.constant 0 : i32
      %42 = arith.cmpi slt, %35, %c0_i32_18 : i32
      %43 = vector.broadcast %42 : i1 to vector<128x128xi1>
      %44 = vector.broadcast %43 : vector<128x128xi1> to vector<128x128xi1>
      %45 = arith.xori %41, %44 : vector<128x128xi1>
      %46 = arith.andi %45, %39 : vector<128x128xi1>
      %47 = vector.broadcast %35 : i32 to vector<128x128xi32>
      %48 = arith.addi %37, %47 : vector<128x128xi32>
      %49 = arith.select %46, %48, %37 : vector<128x128xi1>, vector<128x128xi32>
      %50 = arith.cmpi eq, %32, %49 : vector<128x128xi32>
      %51 = arith.extui %50 : vector<128x128xi1> to vector<128x128xi32>
      %52 = arith.sitofp %51 : vector<128x128xi32> to vector<128x128xf32>
      %c0 = arith.constant 0 : index
      %c0_19 = arith.constant 0 : index
      %53 = vector.load %arg14[%c0, %c0_19] : memref<1x128xf32, #tpu.memory_space<vmem>>, vector<1x128xf32>
      %cst = arith.constant dense<0.000000e+00> : vector<1x128xf32>
      %54 = tpu.matmul %53, %52, %cst {dimension_numbers = #tpu.dot_dimension_numbers<[1], [0], [0], [1], [0, 0, 1, 1], [], []>} : vector<1x128xf32>, vector<128x128xf32>, vector<1x128xf32> -> vector<1x128xf32>
      %c0_20 = arith.constant 0 : index
      %c0_21 = arith.constant 0 : index
      %55 = vector.load %arg15[%c0_20, %c0_21] : memref<1x128xf32, #tpu.memory_space<vmem>>, vector<1x128xf32>
      %cst_22 = arith.constant dense<0.000000e+00> : vector<1x128xf32>
      %56 = tpu.matmul %55, %52, %cst_22 {dimension_numbers = #tpu.dot_dimension_numbers<[1], [0], [0], [1], [0, 0, 1, 1], [], []>} : vector<1x128xf32>, vector<128x128xf32>, vector<1x128xf32> -> vector<1x128xf32>
      %cst_23 = arith.constant 3.125000e-02 : f32
      %57 = vector.broadcast %cst_23 : f32 to vector<1x128xf32>
      %58 = arith.mulf %54, %57 : vector<1x128xf32>
      %cst_24 = arith.constant 3.125000e-02 : f32
      %59 = vector.broadcast %cst_24 : f32 to vector<1x128xf32>
      %60 = arith.mulf %56, %59 : vector<1x128xf32>
      %61 = arith.mulf %58, %58 : vector<1x128xf32>
      %62 = arith.subf %60, %61 : vector<1x128xf32>
      %cst_25 = arith.constant 0.000000e+00 : f32
      %63 = vector.broadcast %cst_25 : f32 to vector<1x128xf32>
      %64 = arith.maximumf %62, %63 : vector<1x128xf32>
      %c0_26 = arith.constant 0 : index
      %c0_27 = arith.constant 0 : index
      %65 = vector.load %arg5[%c0_26, %c0_27] : memref<1x128xf32, #tpu.memory_space<vmem>>, vector<1x128xf32>
      %cst_28 = arith.constant 9.99999974E-6 : f32
      %66 = vector.broadcast %cst_28 : f32 to vector<1x128xf32>
      %67 = arith.addf %64, %66 : vector<1x128xf32>
      %68 = math.rsqrt %67 : vector<1x128xf32>
      %69 = arith.mulf %65, %68 : vector<1x128xf32>
      %c0_29 = arith.constant 0 : index
      %c0_30 = arith.constant 0 : index
      %70 = vector.load %arg6[%c0_29, %c0_30] : memref<1x128xf32, #tpu.memory_space<vmem>>, vector<1x128xf32>
      %c0_31 = arith.constant 0 : index
      %c0_32 = arith.constant 0 : index
      %71 = vector.load %arg4[%c0_31, %c0_32] : memref<1x128xf32, #tpu.memory_space<vmem>>, vector<1x128xf32>
      %72 = arith.addf %58, %71 : vector<1x128xf32>
      %73 = arith.mulf %72, %69 : vector<1x128xf32>
      %74 = arith.subf %70, %73 : vector<1x128xf32>
      %c0_33 = arith.constant 0 : index
      %c0_34 = arith.constant 0 : index
      %75 = vector.load %arg3[%c0_33, %c0_34] : memref<64x128xf32, #tpu.memory_space<vmem>>, vector<64x128xf32>
      %76 = vector.broadcast %69 : vector<1x128xf32> to vector<64x128xf32>
      %77 = arith.mulf %75, %76 : vector<64x128xf32>
      %c0_35 = arith.constant 0 : index
      %c0_36 = arith.constant 0 : index
      %78 = vector.load %arg18[%c0_35, %c0_36] : memref<64x128xf32, #tpu.memory_space<vmem>>, vector<64x128xf32>
      tpu.vector_store %arg18[%c0_35, %c0_36], %77 {strides = array<i32>} : memref<64x128xf32, #tpu.memory_space<vmem>>, vector<64x128xf32>,
      %c0_37 = arith.constant 0 : index
      %c0_38 = arith.constant 0 : index
      %79 = vector.load %arg4[%c0_37, %c0_38] : memref<1x128xf32, #tpu.memory_space<vmem>>, vector<1x128xf32>
      %80 = arith.mulf %79, %69 : vector<1x128xf32>
      %81 = arith.addf %80, %74 : vector<1x128xf32>
      %c0_39 = arith.constant 0 : index
      %c0_40 = arith.constant 0 : index
      %82 = vector.load %arg19[%c0_39, %c0_40] : memref<1x128xf32, #tpu.memory_space<vmem>>, vector<1x128xf32>
      tpu.vector_store %arg19[%c0_39, %c0_40], %81 {strides = array<i32>} : memref<1x128xf32, #tpu.memory_space<vmem>>, vector<1x128xf32>,
      %83 = tpu.iota {dimensions = array<i32: 0>} : vector<128x128xi32>
      %c32_i32_41 = arith.constant 32 : i32
      %c0_i32_42 = arith.constant 0 : i32
      %84 = arith.cmpi eq, %c32_i32_41, %c0_i32_42 : i32
      %c1_i32_43 = arith.constant 1 : i32
      %85 = arith.select %84, %c1_i32_43, %c32_i32_41 : i32
      %86 = vector.broadcast %85 : i32 to vector<128x128xi32>
      %87 = arith.remsi %83, %86 : vector<128x128xi32>
      %c0_i32_44 = arith.constant 0 : i32
      %88 = vector.broadcast %c0_i32_44 : i32 to vector<128x128xi32>
      %89 = arith.cmpi ne, %87, %88 : vector<128x128xi32>
      %c0_i32_45 = arith.constant 0 : i32
      %90 = vector.broadcast %c0_i32_45 : i32 to vector<128x128xi32>
      %91 = arith.cmpi slt, %87, %90 : vector<128x128xi32>
      %c0_i32_46 = arith.constant 0 : i32
      %92 = arith.cmpi slt, %85, %c0_i32_46 : i32
      %93 = vector.broadcast %92 : i1 to vector<128x128xi1>
      %94 = vector.broadcast %93 : vector<128x128xi1> to vector<128x128xi1>
      %95 = arith.xori %91, %94 : vector<128x128xi1>
      %96 = arith.andi %95, %89 : vector<128x128xi1>
      %97 = vector.broadcast %85 : i32 to vector<128x128xi32>
      %98 = arith.addi %87, %97 : vector<128x128xi32>
      %99 = arith.select %96, %98, %87 : vector<128x128xi1>, vector<128x128xi32>
      %100 = tpu.iota {dimensions = array<i32: 1>} : vector<128x128xi32>
      %c32_i32_47 = arith.constant 32 : i32
      %c0_i32_48 = arith.constant 0 : i32
      %101 = arith.cmpi eq, %c32_i32_47, %c0_i32_48 : i32
      %c1_i32_49 = arith.constant 1 : i32
      %102 = arith.select %101, %c1_i32_49, %c32_i32_47 : i32
      %103 = vector.broadcast %102 : i32 to vector<128x128xi32>
      %104 = arith.remsi %100, %103 : vector<128x128xi32>
      %c0_i32_50 = arith.constant 0 : i32
      %105 = vector.broadcast %c0_i32_50 : i32 to vector<128x128xi32>
      %106 = arith.cmpi ne, %104, %105 : vector<128x128xi32>
      %c0_i32_51 = arith.constant 0 : i32
      %107 = vector.broadcast %c0_i32_51 : i32 to vector<128x128xi32>
      %108 = arith.cmpi slt, %104, %107 : vector<128x128xi32>
      %c0_i32_52 = arith.constant 0 : i32
      %109 = arith.cmpi slt, %102, %c0_i32_52 : i32
      %110 = vector.broadcast %109 : i1 to vector<128x128xi1>
      %111 = vector.broadcast %110 : vector<128x128xi1> to vector<128x128xi1>
      %112 = arith.xori %108, %111 : vector<128x128xi1>
      %113 = arith.andi %112, %106 : vector<128x128xi1>
      %114 = vector.broadcast %102 : i32 to vector<128x128xi32>
      %115 = arith.addi %104, %114 : vector<128x128xi32>
      %116 = arith.select %113, %115, %104 : vector<128x128xi1>, vector<128x128xi32>
      %117 = arith.cmpi eq, %99, %116 : vector<128x128xi32>
      %118 = arith.extui %117 : vector<128x128xi1> to vector<128x128xi32>
      %119 = arith.sitofp %118 : vector<128x128xi32> to vector<128x128xf32>
      %c0_53 = arith.constant 0 : index
      %c0_54 = arith.constant 0 : index
      %120 = vector.load %arg16[%c0_53, %c0_54] : memref<1x128xf32, #tpu.memory_space<vmem>>, vector<1x128xf32>
      %cst_55 = arith.constant dense<0.000000e+00> : vector<1x128xf32>
      %121 = tpu.matmul %120, %119, %cst_55 {dimension_numbers = #tpu.dot_dimension_numbers<[1], [0], [0], [1], [0, 0, 1, 1], [], []>} : vector<1x128xf32>, vector<128x128xf32>, vector<1x128xf32> -> vector<1x128xf32>
      %c0_56 = arith.constant 0 : index
      %c0_57 = arith.constant 0 : index
      %122 = vector.load %arg17[%c0_56, %c0_57] : memref<1x128xf32, #tpu.memory_space<vmem>>, vector<1x128xf32>
      %cst_58 = arith.constant dense<0.000000e+00> : vector<1x128xf32>
      %123 = tpu.matmul %122, %119, %cst_58 {dimension_numbers = #tpu.dot_dimension_numbers<[1], [0], [0], [1], [0, 0, 1, 1], [], []>} : vector<1x128xf32>, vector<128x128xf32>, vector<1x128xf32> -> vector<1x128xf32>
      %cst_59 = arith.constant 1.562500e-02 : f32
      %124 = vector.broadcast %cst_59 : f32 to vector<1x128xf32>
      %125 = arith.mulf %121, %124 : vector<1x128xf32>
      %cst_60 = arith.constant 1.562500e-02 : f32
      %126 = vector.broadcast %cst_60 : f32 to vector<1x128xf32>
      %127 = arith.mulf %123, %126 : vector<1x128xf32>
      %128 = arith.mulf %125, %125 : vector<1x128xf32>
      %129 = arith.subf %127, %128 : vector<1x128xf32>
      %cst_61 = arith.constant 0.000000e+00 : f32
      %130 = vector.broadcast %cst_61 : f32 to vector<1x128xf32>
      %131 = arith.maximumf %129, %130 : vector<1x128xf32>
      %c0_62 = arith.constant 0 : index
      %c0_63 = arith.constant 0 : index
      %132 = vector.load %arg10[%c0_62, %c0_63] : memref<1x128xf32, #tpu.memory_space<vmem>>, vector<1x128xf32>
      %cst_64 = arith.constant 9.99999974E-6 : f32
      %133 = vector.broadcast %cst_64 : f32 to vector<1x128xf32>
      %134 = arith.addf %131, %133 : vector<1x128xf32>
      %135 = math.rsqrt %134 : vector<1x128xf32>
      %136 = arith.mulf %132, %135 : vector<1x128xf32>
      %c0_65 = arith.constant 0 : index
      %c0_66 = arith.constant 0 : index
      %137 = vector.load %arg11[%c0_65, %c0_66] : memref<1x128xf32, #tpu.memory_space<vmem>>, vector<1x128xf32>
      %c0_67 = arith.constant 0 : index
      %c0_68 = arith.constant 0 : index
      %138 = vector.load %arg9[%c0_67, %c0_68] : memref<1x128xf32, #tpu.memory_space<vmem>>, vector<1x128xf32>
      %139 = arith.addf %125, %138 : vector<1x128xf32>
      %140 = arith.mulf %139, %136 : vector<1x128xf32>
      %141 = arith.subf %137, %140 : vector<1x128xf32>
      %c0_69 = arith.constant 0 : index
      %c0_70 = arith.constant 0 : index
      %142 = vector.load %arg8[%c0_69, %c0_70] : memref<32x128xf32, #tpu.memory_space<vmem>>, vector<32x128xf32>
      %143 = vector.broadcast %136 : vector<1x128xf32> to vector<32x128xf32>
      %144 = arith.mulf %142, %143 : vector<32x128xf32>
      %c0_71 = arith.constant 0 : index
      %c0_72 = arith.constant 0 : index
      %145 = vector.load %arg20[%c0_71, %c0_72] : memref<32x128xf32, #tpu.memory_space<vmem>>, vector<32x128xf32>
      tpu.vector_store %arg20[%c0_71, %c0_72], %144 {strides = array<i32>} : memref<32x128xf32, #tpu.memory_space<vmem>>, vector<32x128xf32>,
      %c0_73 = arith.constant 0 : index
      %c0_74 = arith.constant 0 : index
      %146 = vector.load %arg9[%c0_73, %c0_74] : memref<1x128xf32, #tpu.memory_space<vmem>>, vector<1x128xf32>
      %147 = arith.mulf %146, %136 : vector<1x128xf32>
      %148 = arith.addf %147, %141 : vector<1x128xf32>
      %c0_75 = arith.constant 0 : index
      %c0_76 = arith.constant 0 : index
      %149 = vector.load %arg21[%c0_75, %c0_76] : memref<1x128xf32, #tpu.memory_space<vmem>>, vector<1x128xf32>
      tpu.vector_store %arg21[%c0_75, %c0_76], %148 {strides = array<i32>} : memref<1x128xf32, #tpu.memory_space<vmem>>, vector<1x128xf32>,
    } else {
    }
    %c1_i32_6 = arith.constant 1 : i32
    %13 = arith.cmpi eq, %arg0, %c1_i32_6 : i32
    %14 = arith.extui %13 : i1 to i32
    %c0_i32_7 = arith.constant 0 : i32
    %15 = arith.cmpi ne, %14, %c0_i32_7 : i32
    scf.if %15 {
      %c0 = arith.constant 0 : index
      %c0_8 = arith.constant 0 : index
      %16 = vector.load %arg2[%c0, %c0_8] : memref<8x64xf32, #tpu.memory_space<vmem>>, vector<8x64xf32>
      %c0_9 = arith.constant 0 : index
      %c0_10 = arith.constant 0 : index
      %17 = vector.load %arg18[%c0_9, %c0_10] : memref<64x128xf32, #tpu.memory_space<vmem>>, vector<64x128xf32>
      %cst = arith.constant dense<0.000000e+00> : vector<8x128xf32>
      %18 = tpu.matmul %16, %17, %cst {dimension_numbers = #tpu.dot_dimension_numbers<[1], [0], [0], [1], [0, 0, 1, 1], [], []>} : vector<8x64xf32>, vector<64x128xf32>, vector<8x128xf32> -> vector<8x128xf32>
      %c0_11 = arith.constant 0 : index
      %c0_12 = arith.constant 0 : index
      %19 = vector.load %arg19[%c0_11, %c0_12] : memref<1x128xf32, #tpu.memory_space<vmem>>, vector<1x128xf32>
      %20 = vector.broadcast %19 : vector<1x128xf32> to vector<8x128xf32>
      %21 = arith.addf %18, %20 : vector<8x128xf32>
      %c0_13 = arith.constant 0 : index
      %c0_14 = arith.constant 0 : index
      %22 = vector.load %arg12[%c0_13, %c0_14] : memref<8x128xf32, #tpu.memory_space<vmem>>, vector<8x128xf32>
      tpu.vector_store %arg12[%c0_13, %c0_14], %21 {strides = array<i32>} : memref<8x128xf32, #tpu.memory_space<vmem>>, vector<8x128xf32>,
      %c0_15 = arith.constant 0 : index
      %c0_16 = arith.constant 0 : index
      %23 = vector.load %arg7[%c0_15, %c0_16] : memref<8x32xf32, #tpu.memory_space<vmem>>, vector<8x32xf32>
      %c0_17 = arith.constant 0 : index
      %c0_18 = arith.constant 0 : index
      %24 = vector.load %arg20[%c0_17, %c0_18] : memref<32x128xf32, #tpu.memory_space<vmem>>, vector<32x128xf32>
      %cst_19 = arith.constant dense<0.000000e+00> : vector<8x128xf32>
      %25 = tpu.matmul %23, %24, %cst_19 {dimension_numbers = #tpu.dot_dimension_numbers<[1], [0], [0], [1], [0, 0, 1, 1], [], []>} : vector<8x32xf32>, vector<32x128xf32>, vector<8x128xf32> -> vector<8x128xf32>
      %c0_20 = arith.constant 0 : index
      %c0_21 = arith.constant 0 : index
      %26 = vector.load %arg21[%c0_20, %c0_21] : memref<1x128xf32, #tpu.memory_space<vmem>>, vector<1x128xf32>
      %27 = vector.broadcast %26 : vector<1x128xf32> to vector<8x128xf32>
      %28 = arith.addf %25, %27 : vector<8x128xf32>
      %c0_22 = arith.constant 0 : index
      %c0_23 = arith.constant 0 : index
      %29 = vector.load %arg13[%c0_22, %c0_23] : memref<8x128xf32, #tpu.memory_space<vmem>>, vector<8x128xf32>
      tpu.vector_store %arg13[%c0_22, %c0_23], %28 {strides = array<i32>} : memref<8x128xf32, #tpu.memory_space<vmem>>, vector<8x128xf32>,
    } else {
    }
    return
  }
  func.func @transform_0(%arg0: i32, %arg1: i32) -> (i32, i32) {
    %c0_i32 = arith.constant 0 : i32
    %c0_i32_0 = arith.constant 0 : i32
    return %arg1, %c0_i32 : i32, i32
  }
  func.func @transform_1(%arg0: i32, %arg1: i32) -> (i32, i32) {
    %c0_i32 = arith.constant 0 : i32
    %c0_i32_0 = arith.constant 0 : i32
    %c0_i32_1 = arith.constant 0 : i32
    return %c0_i32, %c0_i32_0 : i32, i32
  }
  func.func @transform_2(%arg0: i32, %arg1: i32) -> (i32, i32) {
    %c0_i32 = arith.constant 0 : i32
    %c0_i32_0 = arith.constant 0 : i32
    %c0_i32_1 = arith.constant 0 : i32
    return %c0_i32, %c0_i32_0 : i32, i32
  }
  func.func @transform_3(%arg0: i32, %arg1: i32) -> (i32, i32) {
    %c0_i32 = arith.constant 0 : i32
    %c0_i32_0 = arith.constant 0 : i32
    %c0_i32_1 = arith.constant 0 : i32
    return %c0_i32, %c0_i32_0 : i32, i32
  }
  func.func @transform_4(%arg0: i32, %arg1: i32) -> (i32, i32) {
    %c0_i32 = arith.constant 0 : i32
    %c0_i32_0 = arith.constant 0 : i32
    %c0_i32_1 = arith.constant 0 : i32
    return %c0_i32, %c0_i32_0 : i32, i32
  }
  func.func @transform_5(%arg0: i32, %arg1: i32) -> (i32, i32) {
    %c0_i32 = arith.constant 0 : i32
    %c0_i32_0 = arith.constant 0 : i32
    return %arg1, %c0_i32 : i32, i32
  }
  func.func @transform_6(%arg0: i32, %arg1: i32) -> (i32, i32) {
    %c0_i32 = arith.constant 0 : i32
    %c0_i32_0 = arith.constant 0 : i32
    %c0_i32_1 = arith.constant 0 : i32
    return %c0_i32, %c0_i32_0 : i32, i32
  }
  func.func @transform_7(%arg0: i32, %arg1: i32) -> (i32, i32) {
    %c0_i32 = arith.constant 0 : i32
    %c0_i32_0 = arith.constant 0 : i32
    %c0_i32_1 = arith.constant 0 : i32
    return %c0_i32, %c0_i32_0 : i32, i32
  }
  func.func @transform_8(%arg0: i32, %arg1: i32) -> (i32, i32) {
    %c0_i32 = arith.constant 0 : i32
    %c0_i32_0 = arith.constant 0 : i32
    %c0_i32_1 = arith.constant 0 : i32
    return %c0_i32, %c0_i32_0 : i32, i32
  }
  func.func @transform_9(%arg0: i32, %arg1: i32) -> (i32, i32) {
    %c0_i32 = arith.constant 0 : i32
    %c0_i32_0 = arith.constant 0 : i32
    %c0_i32_1 = arith.constant 0 : i32
    return %c0_i32, %c0_i32_0 : i32, i32
  }
  func.func @transform_10(%arg0: i32, %arg1: i32) -> (i32, i32) {
    %0 = arith.muli %arg0, %arg1 : i32
    %c0_i32 = arith.constant 0 : i32
    %c0_i32_0 = arith.constant 0 : i32
    return %0, %c0_i32 : i32, i32
  }
  func.func @transform_11(%arg0: i32, %arg1: i32) -> (i32, i32) {
    %0 = arith.muli %arg0, %arg1 : i32
    %c0_i32 = arith.constant 0 : i32
    %c0_i32_0 = arith.constant 0 : i32
    return %0, %c0_i32 : i32, i32
  }
}

</mosaic_0001>

<bundles_post_ra>
// kernel: tpu_custom_call.1
= control target key start
LH: loop header
LB: loop body
LE: loop exit
PB: predicated region body
PF: predicated region fallthrough
CT: control target
= control target key end

     0   :  { %s3391_s0 = inlined_call_operand.hbm [shape: f32[32,64], index: 0, kind: input, shape index: {}]   ;;  %s3392_s1 = inlined_call_operand.hbm [shape: f32[64,128], index: 1, kind: input, shape index: {}]   ;;  %s3393_s2 = inlined_call_operand.vmem [shape: f32[1,128], index: 2, kind: input, shape index: {}]   ;;  %s3394_s3 = inlined_call_operand.vmem [shape: f32[1,128], index: 3, kind: input, shape index: {}]   ;;  %s3395_s4 = inlined_call_operand.vmem [shape: f32[1,128], index: 4, kind: input, shape index: {}]   ;;  %s3396_s5 = inlined_call_operand.hbm [shape: f32[32,32], index: 5, kind: input, shape index: {}]   ;;  %s3397_s6 = inlined_call_operand.hbm [shape: f32[32,128], index: 6, kind: input, shape index: {}]   ;;  %s3398_s7 = inlined_call_operand.vmem [shape: f32[1,128], index: 7, kind: input, shape index: {}]   ;;  %s3399_s8 = inlined_call_operand.vmem [shape: f32[1,128], index: 8, kind: input, shape index: {}]   ;;  %s3400_s9 = inlined_call_operand.vmem [shape: f32[1,128], index: 9, kind: input, shape index: {}]   ;;  %s3401_s10 = inlined_call_operand.hbm [shape: f32[32,128], index: 10, kind: output, shape index: {0}]   ;;  %s3402_s11 = inlined_call_operand.hbm [shape: f32[32,128], index: 11, kind: output, shape index: {1}]  }
   0x1   :  { %3425 = sst [smem:[#allocation33_spill]] %s3391_s0 }
   0x2   :  { %3426 = sst [smem:[#allocation34_spill]] %s3392_s1 }
   0x3   :  { %3427 = sst [smem:[#allocation35_spill]] %s3393_s2 }
   0x4   :  { %3428 = sst [smem:[#allocation36_spill]] %s3394_s3 }
   0x5   :  { %3429 = sst [smem:[#allocation37_spill]] %s3395_s4 }
   0x6   :  { %3430 = sst [smem:[#allocation38_spill]] %s3398_s7 }
   0x7   :  { %3431 = sst [smem:[#allocation39_spill]] %s3399_s8 }
   0x8   :  { %3432 = sst [smem:[#allocation40_spill]] %s3400_s9 }
   0x9   :  { %3433 = sst [smem:[#allocation41_spill]] %s3401_s10 }
   0xa   :  { %3434 = sst [smem:[#allocation42_spill]] %s3402_s11 }
   0xb   :  { %17 = vsyncpa [#allocation11], 0 }
   0xc   :  { %19 = vsyncpa [#allocation11 + $0x1], 0 }
   0xd   :  { %20 = vsyncpa [#allocation14], 0 }
   0xe   :  { %21 = vsyncpa [#allocation12], 0 }
   0xf   :  { %23 = vsyncpa [#allocation12 + $0x1], 0 }
  0x10   :  { %24 = vsyncpa [#allocation19], 0 }
  0x11   :  { %26 = vsyncpa [#allocation19 + $0x1], 0  ;;  %s2770_s17 = smov 0   ;;  %s2772_s18 = smov 0  }
  0x12   :  { %s2774_s19 = smov 0   ;;  %s2776_s20 = smov 0  }
  0x13   :  { %s2778_s21 = smov 0   ;;  %s2780_s22 = smov 0  }
  0x14   :  { %s2782_s23 = smov 0   ;;  %s2784_s24 = smov 0  }
  0x15   :  { %s2786_s25 = smov 0   ;;  %s2788_s26 = smov 0  }
  0x16   :  { %s2790_s27 = smov 0  }
  0x17 LB: > { %3435 = sst [smem:[#allocation26_spill]] %s2649_s17  ;;  %s2824_s28 = sadd.s32 4294967295, %s2689_s27   ;;  %s2689_s27 = sphi %s2790_s27, %s32_s27   ;;  %s2685_s26 = sphi %s2788_s26, %s3498_s26   ;;  %s2681_s25 = sphi %s2786_s25, %s3506_s25   ;;  %s2677_s24 = sphi %s2784_s24, %s3496_s24   ;;  %s2673_s23 = sphi %s2782_s23, %s3505_s23   ;;  %s2669_s22 = sphi %s2780_s22, %s3504_s22   ;;  %s2665_s21 = sphi %s2778_s21, %s3503_s21   ;;  %s2661_s20 = sphi %s2776_s20, %s3502_s20   ;;  %s2657_s19 = sphi %s2774_s19, %s3501_s19   ;;  %s2653_s18 = sphi %s2772_s18, %s3500_s18   ;;  %s2649_s17 = sphi %s2770_s17, %s3499_s17  }
  0x18   : > { %3436 = sst [smem:[#allocation27_spill]] %s2673_s23  ;;  %s1719_s29 = sadd.s32 4294967294, %s2689_s27  }
  0x19   : > { %3437 = sst [smem:[#allocation28_spill]] %s2685_s26  ;;  %p64_p0 = scmp.ne.s32.totalorder %s2665_s21, %s2661_s20 }
  0x1a   : > { %p3409_p1 = scmp.eq.s32.totalorder %s2824_s28, 0  ;;  %p283_p2 = scmp.ne.s32.totalorder %s2657_s19, %s2653_s18 }
  0x1b   : > { %p284_p3 = scmp.eq.s32.totalorder %s2824_s28, 7  ;;  %p289_p5 = scmp.ne.s32.totalorder %s2653_s18, %s2649_s17 }
  0x1c   : > { %p2834_p4 = por %p3409_p1, %p64_p0  ;;  %p290_p7 = scmp.eq.s32.totalorder %s1719_s29, 7 }
  0x1d   : > { %p2840_p6 = por %p284_p3, %p283_p2  ;;  %p1720_p8 = scmp.ge.s32.totalorder %s2689_s27, 1 }
  0x1e   : > { %s3438_s30 = scalar_select %p2834_p4, 1, 0 }
  0x1f   : > { %s3439_s12 = scalar_select %p2840_p6, 1, 0 }
  0x20   : > { %p325_p9 = scmp.lt.s32.totalorder %s2689_s27, 9  ;;  %p2846_p10 = por %p290_p7, %p289_p5 }
  0x21   : > { %3440 = sst [smem:[#allocation29_spill]] %s3439_s12  ;;  %s2691_s15 = smov [#allocation13]  }
  0x22   : > { %s3441_s13 = scalar_select %p2846_p10, 1, 0 }
  0x23   : > { %p2850_p11 = pnand %p1720_p8, %p325_p9  ;;  %s337_s16 = sshll.u32 %s2691_s15, 4  ;;  %s338_s16 = int_to_ptr.vmem [resolvable:$true] %s337_s16 }
  0x24   : > { %3442 = sst [smem:[#allocation30_spill]] %s3441_s13  ;;  %s3445_s1 = sld [smem:[#allocation34_spill]] }
  0x25   : > { %s3443_s14 = scalar_select %p2850_p11, 1, 0 }
  0x26   : > { %p2273_p12 = pneg %p2850_p11 }
  0x28   : > { %p2858_p13 = pnand %p2273_p12, %p3409_p1 }
  0x2a   : > { %s2407_s13 = scalar_lea.hbm %s3445_s1, 1024  ;;  %p3421_p2 = pneg %p2858_p13 }
  0x2b   : > { %p2408_p0 = scmp.ne.s32.totalorder %s3445_s1, %s2407_s13  ;;  %p2414_p7 = scmp.lt.u32.totalorder %s2407_s13, %s3445_s1 }
  0x2d   : > { %p2410_p3 = pnand %p3421_p2, %p2408_p0 }
  0x2f   : > { %p2411_p5 = pneg %p2410_p3 }
  0x31   : > { %p2416_p8 = pnand %p2414_p7, %p2411_p5 }
  0x33   : > { %2419 = shalt.err (!%p2416_p8)
}
  0x34   : > { %s2420_s17 = scalar_lea.vmem %s338_s16, 1024  ;;  %p2428_p10 = scmp.lt.s32.totalorder %s338_s16, %s338_s16 }
  0x35   : > { %p2421_p9 = scmp.ne.s32.totalorder %s338_s16, %s2420_s17  ;;  %p2429_p6 = scmp.lt.s32.totalorder %s2420_s17, %s2420_s17 }
  0x37   : > { %p2423_p12 = pnand %p2421_p9, %p3421_p2  ;;  %p2430_p4 = por %p2429_p6, %p2428_p10 }
  0x39   : > { %p2424_p1 = pneg %p2423_p12 }
  0x3b   : > { %p2431_p11 = pnand %p2430_p4, %p2424_p1 }
  0x3d   : > { %2434 = shalt.err (!%p2431_p11)
}
  0x3e   : > { %s3413_s10 = smov 128   ;;  %s3414_s11 = smov 8  }
  0x3f   : > { %2276 = dma.hbm_to_vmem [thread:$0]  (!%p2858_p13), %s3445_s1, 1024, %s338_s16, [#allocation14], %s3413_s10, %s3413_s10, %s3414_s11  }
  0x40   : > { %s41_s29 = sadd.s32 1, %s2681_s25  ;;  %s44_s15 = sadd.s32 1, %s2685_s26 }
  0x41   : > { %p42_p1 = scmp.ge.s32.totalorder %s41_s29, 4  ;;  %s51_s17 = sadd.s32 1, %s2669_s22 }
  0x42   : > { %p58_p4 = scmp.ne.s32.totalorder %s2669_s22, %s2665_s21  ;;  %p59_p6 = scmp.eq.s32.totalorder %s2689_s27, 0 }
  0x43   : > { %s3508_s29 = smov (%p42_p1, %s41_s29), 0  ;;  %s3510_s15 = smov (!%p42_p1, %s44_s15), %s2685_s26 }
  0x44   : > { %3446 = sst [smem:[#allocation31_spill]] %s3508_s29  ;;  %s48_s9 = ssub.s32 %s2681_s25, %s3508_s29 }
  0x45   : > { %p2898_p10 = por %p59_p6, %p58_p4  ;;  %p46_p11 = scmp.ge.s32.totalorder %s3510_s15, 2 }
  0x46   : > { %p49_p0 = scmp.eq.s32.totalorder %s48_s9, 0  ;;  %s268_s12 = smul.u32 %s2681_s25, %s2685_s26 }
  0x47   : > { %s273_s13 = sadd.s32 1, %s2657_s19  ;;  %s3512_s15 = smov (%p46_p11, %s3510_s15), 0 }
  0x48   : > { %3448 = sst [smem:[#allocation32_spill]] %s3512_s15  ;;  %s269_s11 = smul.u32 %s3512_s15, %s3508_s29 }
  0x49   : > { %s2908_s10 = scalar_select %p49_p0, %s2669_s22, %s51_s17  }
  0x4a   : > { %p2296_p3 = scmp.lt.s32.totalorder %s2689_s27, 8  ;;  %s382_s1 = sand.u32 1, %s2689_s27  }
  0x4b   : > { %s384_s8 = sand.u32 1, %s2669_s22   ;;  %s270_s7 = ssub.s32 %s268_s12, %s269_s11 }
  0x4c   : > { %p271_p5 = scmp.eq.s32.totalorder %s270_s7, 0  ;;  %s2915_s4 = sshll.u32 %s384_s8, 3 }
  0x4d   : > { %s1725_s3 = sshll.u32 %s2681_s25, 7  ;;  %s3449_s0 = sld [smem:[#allocation33_spill]] }
  0x4e   : > { %s2919_s2 = scalar_select %p271_p5, %s2657_s19, %s273_s13  }
  0x4f   : > { %s386_s17 = scalar_lea.vmem [#allocation10], %s2915_s4  ;;  %p2931_p7 = pnand %p2296_p3, %p2898_p10 }
  0x50   : > { %s393_s15 = sshll.u32 %s386_s17, 4  ;;  %s2938_s26 = scalar_lea.hbm %s3396_s5, %s1725_s3  ;;  %s2927_s15 = int_to_ptr.vmem [resolvable:$true] %s393_s15 }
  0x51   : > { %s3450_s7 = scalar_select %p2931_p7, 1, 0 }
  0x52   : > { %s2940_s12 = scalar_lea.sflag [#allocation11], %s382_s1  ;;  %p3422_p9 = pneg %p2931_p7 }
  0x53   : > { %s2924_s23 = scalar_lea.hbm %s3449_s0, %s1725_s3  ;;  %s2440_s17 = scalar_lea.hbm %s3449_s0, 512 }
  0x54   : > { %s2435_s13 = scalar_lea.hbm %s2924_s23, 128  ;;  %p2441_p4 = scmp.lt.u32.totalorder %s2924_s23, %s3449_s0 }
  0x55   : > { %p2436_p8 = scmp.ne.s32.totalorder %s2924_s23, %s2435_s13  ;;  %p2442_p6 = scmp.lt.u32.totalorder %s2440_s17, %s2435_s13 }
  0x56   : > { %p2444_p11 = scmp.lt.u32.totalorder %s2435_s13, %s2924_s23 }
  0x57   : > { %p2438_p12 = pnand %p3422_p9, %p2436_p8  ;;  %p2443_p10 = por %p2442_p6, %p2441_p4 }
  0x59   : > { %p2439_p1 = pneg %p2438_p12  ;;  %p2445_p0 = por %p2444_p11, %p2443_p10 }
  0x5b   : > { %p2446_p3 = pnand %p2445_p0, %p2439_p1 }
  0x5d   : > { %2449 = shalt.err (!%p2446_p3)
}
  0x5e   : > { %s2450_s1 = scalar_lea.vmem %s2927_s15, 128  ;;  %s2694_s3 = smov [#allocation10]  }
  0x5f   : > { %p2451_p5 = scmp.ne.s32.totalorder %s2927_s15, %s2450_s1  ;;  %s2455_s11 = sshll.u32 %s2694_s3, 4  ;;  %s2456_s11 = int_to_ptr.vmem [resolvable:$false] %s2455_s11 }
  0x60   : > { %s2457_s29 = scalar_lea.vmem %s2456_s11, 256  ;;  %p2458_p2 = scmp.lt.s32.totalorder %s2927_s15, %s2456_s11 }
  0x61   : > { %p2453_p8 = pnand %p2451_p5, %p3422_p9  ;;  %p2459_p4 = scmp.lt.s32.totalorder %s2457_s29, %s2450_s1 }
  0x63   : > { %p2454_p12 = pneg %p2453_p8  ;;  %p2460_p6 = por %p2459_p4, %p2458_p2 }
  0x65   : > { %p2461_p10 = pnand %p2460_p6, %p2454_p12 }
  0x67   : > { %2464 = shalt.err (!%p2461_p10)
}
  0x68   : > { %2283 = dma.hbm_to_vmem [thread:$0]  (!%p2931_p7), %s2924_s23, 128, %s2927_s15, %s2940_s12  }
  0x69   : > { %s2695_s13 = smov [#allocation16]   ;;  %s404_s9 = scalar_lea.vmem [#allocation15], %s2915_s4 }
  0x6a   : > { %s359_s16 = sshll.u32 %s2695_s13, 4  ;;  %s411_s17 = sshll.u32 %s404_s9, 4  ;;  %s360_s16 = int_to_ptr.vmem [resolvable:$true] %s359_s16  ;;  %s2969_s17 = int_to_ptr.vmem [resolvable:$true] %s411_s17 }
  0x6b   : > { %s2465_s3 = scalar_lea.hbm %s3397_s6, 512  ;;  %p3451_p1 = pneg %p2858_p13 }
  0x6c   : > { %p2466_p2 = scmp.ne.s32.totalorder %s3397_s6, %s2465_s3  ;;  %p2472_p3 = scmp.lt.u32.totalorder %s2465_s3, %s3397_s6 }
  0x6e   : > { %p2468_p11 = pnand %p2466_p2, %p3451_p1 }
  0x70   : > { %p2469_p0 = pneg %p2468_p11 }
  0x72   : > { %p2474_p5 = pnand %p2472_p3, %p2469_p0 }
  0x74   : > { %2477 = shalt.err (!%p2474_p5)
}
  0x75   : > { %s2478_s4 = scalar_lea.vmem %s360_s16, 512  ;;  %p3452_p12 = pmov %p3451_p1 }
  0x76   : > { %p2479_p8 = scmp.ne.s32.totalorder %s360_s16, %s2478_s4  ;;  %p2486_p10 = scmp.lt.s32.totalorder %s360_s16, %s360_s16 }
  0x77   : > { %p2487_p9 = scmp.lt.s32.totalorder %s2478_s4, %s2478_s4 }
  0x78   : > { %p2481_p4 = pnand %p2479_p8, %p3452_p12 }
  0x79   : > { %p2488_p7 = por %p2487_p9, %p2486_p10 }
  0x7a   : > { %p2482_p6 = pneg %p2481_p4 }
  0x7c   : > { %p2489_p1 = pnand %p2488_p7, %p2482_p6 }
  0x7e   : > { %2492 = shalt.err (!%p2489_p1)
}
  0x7f   : > { %s3453_s13 = smov 8   ;;  %s3454_s9 = smov 128  }
  0x80   : > { %2279 = dma.hbm_to_vmem [thread:$0]  (!%p2858_p13), %s3397_s6, 512, %s360_s16, [#allocation14], %s3454_s9, %s3454_s9, %s3453_s13  }
  0x81   : > { %s2493_s3 = scalar_lea.hbm %s2938_s26, 128  ;;  %p3455_p11 = scmp.ne.s32.totalorder %s3450_s7, 0 }
  0x82   : > { %p2494_p2 = scmp.ne.s32.totalorder %s2938_s26, %s2493_s3  ;;  %s2498_s29 = scalar_lea.hbm %s3396_s5, 512 }
  0x83   : > { %p3456_p9 = pneg %p3455_p11  ;;  %p2499_p3 = scmp.lt.u32.totalorder %s2938_s26, %s3396_s5 }
  0x84   : > { %p2500_p5 = scmp.lt.u32.totalorder %s2498_s29, %s2493_s3  ;;  %p2502_p12 = scmp.lt.u32.totalorder %s2493_s3, %s2938_s26 }
  0x85   : > { %p2496_p7 = pnand %p2494_p2, %p3456_p9 }
  0x86   : > { %p2501_p8 = por %p2500_p5, %p2499_p3 }
  0x87   : > { %p2497_p0 = pneg %p2496_p7 }
  0x88   : > { %p2503_p4 = por %p2502_p12, %p2501_p8 }
  0x8a   : > { %p2504_p6 = pnand %p2503_p4, %p2497_p0 }
  0x8c   : > { %2507 = shalt.err (!%p2504_p6)
}
  0x8d   : > { %s2508_s16 = scalar_lea.vmem %s2969_s17, 128  ;;  %p3457_p10 = pmov %p3456_p9 }
  0x8e   : > { %p2509_p13 = scmp.ne.s32.totalorder %s2969_s17, %s2508_s16  ;;  %s2696_s4 = smov [#allocation15]  }
  0x8f   : > { %s2513_s13 = sshll.u32 %s2696_s4, 4  ;;  %s2514_s13 = int_to_ptr.vmem [resolvable:$false] %s2513_s13 }
  0x90   : > { %p2511_p1 = pnand %p2509_p13, %p3457_p10  ;;  %s2515_s9 = scalar_lea.vmem %s2514_s13, 256 }
  0x91   : > { %p2516_p9 = scmp.lt.s32.totalorder %s2969_s17, %s2514_s13  ;;  %p2517_p7 = scmp.lt.s32.totalorder %s2515_s9, %s2508_s16 }
  0x92   : > { %p2512_p2 = pneg %p2511_p1 }
  0x93   : > { %p2518_p3 = por %p2517_p7, %p2516_p9 }
  0x95   : > { %p2519_p5 = pnand %p2518_p3, %p2512_p2 }
  0x97   : > { %2522 = shalt.err (!%p2519_p5)
}
  0x98   : > { %2286 = dma.hbm_to_vmem [thread:$0]  (!%p3455_p11), %s2938_s26, 128, %s2969_s17, %s2940_s12  }
  0x99   : > { %p3458_p0 = scmp.ne.s32.totalorder %s3443_s14, 0 }
  0x9a   : > { %s422_s8 = sand.u32 (!%p3458_p0), 1, %s2824_s28   ;;  %s424_s1 = sand.u32 (!%p3458_p0), 1, %s2665_s21  }
  0x9b   : > { %420 = sbr.rel (%p3458_p0) target bundleno = 1043 (0x413), region = 60  ;;  %s3022_s3 = sshll.u32 (!%p3458_p0), %s424_s1, 3 }
  0x9c   : > { %s423_s11 = scalar_lea.sflag (!%p3458_p0), [#allocation11], %s422_s8  ;;  %s426_s20 = scalar_lea.vmem (!%p3458_p0), [#allocation10], %s3022_s3 }
  0x9d   : > { %p3459_p8 = scmp.ne.s32.totalorder (!%p3458_p0), %s3438_s30, 0 }
  0xa2   : > { %2624 = dma.done.wait (%p3459_p8), %s423_s11, 128  }
  0xa3   : > { %2626 = vsyncadd (%p3459_p8), %s423_s11, 4294967168  ;;  %p3460_p11 = scmp.eq.s32.totalorder %s2824_s28, 0 }
  0xa5   : > { %2628 = dma.done.wait (%p3460_p11), [#allocation14], 1024   ;;  %p3461_p12 = pmov %p3460_p11 }
  0xa6   : > { %s439_s14 = scalar_lea.vmem [#allocation15], %s3022_s3 }
  0xa7   : > { %2630 = vsyncadd (%p3461_p12), [#allocation14], 4294966272 }
  0xa8   : > { %2632 = dma.done.wait (%p3459_p8), %s423_s11, 128  }
  0xa9   : > { %2634 = vsyncadd (%p3459_p8), %s423_s11, 4294967168  ;;  %p3462_p4 = pmov %p3460_p11 }
  0xab   : > { %2636 = dma.done.wait (%p3462_p4), [#allocation14], 512   ;;  %p3463_p6 = pmov %p3462_p4 }
  0xac   : > { %s3464_s7 = sld [smem:[#allocation27_spill]]  ;;  %s3043_s26 = sand.u32 1, %s2653_s18  }
  0xad   : > { %2638 = vsyncadd (%p3463_p6), [#allocation14], 4294966784  ;;  %p494_p13 = scmp.eq.s32.totalorder %s2677_s24, 0  ;;  %s1733_s12 = sshll.u32 %s3043_s26, 3 }
  0xae   : > { %s3050_s30 = scalar_lea.vmem [#allocation17], %s1733_s12  ;;  %s3052_s17 = scalar_lea.vmem [#allocation18], %s1733_s12 }
  0xb2   : > { %p495_p10 = scmp.eq.s32.totalorder %s3464_s7, 0 }
  0xb4   : > { %p496_p1 = pnand %p495_p10, %p494_p13 }
  0xb5   : > { %v2697_v0 = vmov (!%p496_p1), 0.0  }
  0xb6   : > { %499 = sbr.rel (%p496_p1) target bundleno = 189 (0xbd), region = 80  ;;  %500 = vst [vmem:[#allocation2] sm:$0x1] (!%p496_p1), %v2697_v0  ;;  %501 = vst [vmem:[#allocation3] sm:$0x1] (!%p496_p1), %v2697_v0 }
  0xb7   : > { %502 = vst [vmem:[#allocation4] sm:$0x1] (!%p496_p1), %v2697_v0  ;;  %503 = vst [vmem:[#allocation5] sm:$0x1] (!%p496_p1), %v2697_v0 }
  0xbd PF: > { %p1735_p2 = scmp.ne.s32.totalorder %s2677_s24, 0 }
  0xbe   : > { %v508_v1 = vld [vmem:[#allocation13] sm:$0xff] (!%p1735_p2)  ;;  %v509_v2 = vld [vmem:[#allocation13 + $0x8] sm:$0xff] (!%p1735_p2)  ;;  %v610_v3 = vld [vmem:[#allocation16] sm:$0xff] (!%p1735_p2)  ;;  %v2698_v4 = vmov (!%p1735_p2), 0.0|0.0   ;;  %vm2699_vm0 = vmmov (!%p1735_p2), 0   ;;  %v2700_v12 = vmov (!%p1735_p2), 0.0  }
  0xbf   : > { %506 = sbr.rel (%p1735_p2) target bundleno = 437 (0x1b5), region = 84  ;;  %2125 = vmatprep.subr.bf16.mxu0 (!%p1735_p2), %v2698_v4  ;;  %v2126_v5 = vpack.c.bf16 (!%p1735_p2), %v509_v2, %v508_v1  ;;  %2137 = vmatprep.subr.bf16.mxu1 (!%p1735_p2), %v2698_v4  ;;  %v611_v6 = vld [vmem:[#allocation16 + $0x8] sm:$0xff] (!%p1735_p2)  ;;  %v510_v7 = vld [vmem:[#allocation13 + $0x10] sm:$0xff] (!%p1735_p2)  ;;  %v612_v10 = vld [vmem:[#allocation16 + $0x10] sm:$0xff] (!%p1735_p2)  ;;  %vm614_vm1 = vcmask (!%p1735_p2), 261120   ;;  %vm516_vm2 = vcmask (!%p1735_p2), 523264  }
  0xc0   : > { %v511_v8 = vld [vmem:[#allocation13 + $0x18] sm:$0xff] (!%p1735_p2)  ;;  %v2138_v9 = vpack.c.bf16 (!%p1735_p2), %v611_v6, %v610_v3  ;;  %v613_v11 = vld [vmem:[#allocation16 + $0x18] sm:$0xff] (!%p1735_p2)  ;;  %1952 = vmatprep.mubr.msk.f32.mxu1 (!%p1735_p2), %vm2699_vm0, %v2700_v12  ;;  %1941 = vmatprep.mubr.msk.f32.mxu0 (!%p1735_p2), %vm2699_vm0, %v2700_v12  ;;  %v512_v15 = vld [vmem:[#allocation13 + $0x20] sm:$0xff] (!%p1735_p2) }
  0xc1   : > { %2127 = vmatpush3.bf16.msra.mxu0 (!%p1735_p2), %v2126_v5  ;;  %v2129_v13 = vpack.c.bf16 (!%p1735_p2), %v511_v8, %v510_v7  ;;  %v2141_v14 = vpack.c.bf16 (!%p1735_p2), %v613_v11, %v612_v10  ;;  %v513_v16 = vld [vmem:[#allocation13 + $0x28] sm:$0xff] (!%p1735_p2)  ;;  %v514_v19 = vld [vmem:[#allocation13 + $0x30] sm:$0xff] (!%p1735_p2)  ;;  %v515_v20 = vld [vmem:[#allocation13 + $0x38] sm:$0xff] (!%p1735_p2) }
  0xc2   : > { %2139 = vmatpush3.bf16.msra.mxu1 (!%p1735_p2), %v2138_v9  ;;  %2128 = vmatprep.subr.bf16.mxu0 (!%p1735_p2), %v2698_v4  ;;  %v2132_v17 = vpack.c.bf16 (!%p1735_p2), %v513_v16, %v512_v15  ;;  %v609_v18 = vld [vmem:[%s439_s14] sm:$0xff] (!%p1735_p2)  ;;  %v2135_v21 = vpack.c.bf16 (!%p1735_p2), %v515_v20, %v514_v19  ;;  %v507_v22 = vld [vmem:[%s426_s20] sm:$0xff] (!%p1735_p2) }
  0xc3   : > { %2140 = vmatprep.subr.bf16.mxu1 (!%p1735_p2), %v2698_v4  ;;  %v688_v39 = vld [vmem:[#allocation4] sm:$0x1] (!%p1735_p2)  ;;  %v697_v44 = vld [vmem:[#allocation5] sm:$0x1] (!%p1735_p2)  ;;  %v590_v54 = vld [vmem:[#allocation2] sm:$0x1] (!%p1735_p2) }
  0xc4   : > { %v599_v57 = vld [vmem:[#allocation3] sm:$0x1] (!%p1735_p2) }
  0xc5   : > { %2130 = vmatpush3.bf16.msra.mxu0 (!%p1735_p2), %v2129_v13 }
  0xc6   : > { %2142 = vmatpush3.bf16.msra.mxu1 %v2141_v14  ;;  %2131 = vmatprep.subr.bf16.mxu0 %v2698_v4 }
  0xc9   : > { %2133 = vmatpush3.bf16.msra.mxu0 %v2132_v17  ;;  %1953 = vmatmul.mubr.msk.f32.vlgmr.msra.gmra.mrb[0].mxu1 %vm614_vm1, %v609_v18 }
  0xca   : > { %2134 = vmatprep.subr.bf16.mxu0 %v2698_v4 }
  0xcd   : > { %2136 = vmatpush3.bf16.msra.mxu0 %v2135_v21 }
  0xd0   : > { %1942 = vmatmul.mubr.msk.f32.vlgmr.msra.gmra.mrb[0].mxu0 %vm516_vm2, %v507_v22 }
 0x19c   : > { %v684_v23 = vpop.f32.mrb[0].mxu1 }
 0x19d   : > { %v689_v24 = vrot.slane %v684_v23, 4  ;;  %v698_v25 = vmul.f32 %v684_v23, %v684_v23  ;;  %v1954_v26 = vpop.f32.mrb[1].mxu1 }
 0x19f   : > { %v690_v27 = vadd.f32 %v689_v24, %v684_v23  ;;  %v699_v28 = vrot.slane %v698_v25, 4 }
 0x1a1   : > { %v691_v29 = vrot.slane %v690_v27, 2  ;;  %v700_v30 = vadd.f32 %v699_v28, %v698_v25 }
 0x1a3   : > { %v692_v31 = vadd.f32 %v691_v29, %v690_v27  ;;  %v701_v32 = vrot.slane %v700_v30, 2  ;;  %v586_v33 = vpop.f32.mrb[0].mxu0 }
 0x1a4   : > { %v591_v34 = vrot.slane %v586_v33, 4  ;;  %v600_v35 = vmul.f32 %v586_v33, %v586_v33  ;;  %v1943_v36 = vpop.f32.mrb[1].mxu0 }
 0x1a5   : > { %v693_v37 = vrot.slane %v692_v31, 1  ;;  %v702_v38 = vadd.f32 %v701_v32, %v700_v30 }
 0x1a6   : > { %v592_v40 = vadd.f32 %v591_v34, %v586_v33  ;;  %v601_v41 = vrot.slane %v600_v35, 4 }
 0x1a7   : > { %v694_v42 = vadd.f32 %v693_v37, %v692_v31  ;;  %v703_v43 = vrot.slane %v702_v38, 1 }
 0x1a8   : > { %v593_v45 = vrot.slane %v592_v40, 2  ;;  %v602_v46 = vadd.f32 %v601_v41, %v600_v35 }
 0x1a9   : > { %v695_v47 = vadd.f32 %v694_v42, %v688_v39  ;;  %v704_v48 = vadd.f32 %v703_v43, %v702_v38 }
 0x1aa   : > { %v594_v49 = vadd.f32 %v593_v45, %v592_v40  ;;  %v603_v50 = vrot.slane %v602_v46, 2 }
 0x1ab   : > { %696 = vst [vmem:[#allocation4] sm:$0x1] %v695_v47  ;;  %v705_v51 = vadd.f32 %v704_v48, %v697_v44 }
 0x1ac   : > { %v595_v52 = vrot.slane %v594_v49, 1  ;;  %v604_v53 = vadd.f32 %v603_v50, %v602_v46 }
 0x1ad   : > { %706 = vst [vmem:[#allocation5] sm:$0x1] %v705_v51 }
 0x1ae   : > { %v596_v55 = vadd.f32 %v595_v52, %v594_v49  ;;  %v605_v56 = vrot.slane %v604_v53, 1 }
 0x1b0   : > { %v597_v58 = vadd.f32 %v596_v55, %v590_v54  ;;  %v606_v59 = vadd.f32 %v605_v56, %v604_v53 }
 0x1b2   : > { %598 = vst [vmem:[#allocation2] sm:$0x1] %v597_v58  ;;  %v607_v60 = vadd.f32 %v606_v59, %v599_v57 }
 0x1b4   : > { %608 = vst [vmem:[#allocation3] sm:$0x1] %v607_v60 }
 0x1b5 PF: > { %p707_p9 = scmp.eq.s32.totalorder %s2677_s24, 1 }
 0x1b7   : > { %p708_p7 = pnand %p707_p9, %p495_p10 }
 0x1b8   : > { %v712_v61 = vlaneseq (!%p708_p7)  ;;  %v2701_v62 = vmov (!%p708_p7), 0.0|0.0   ;;  %vm2702_vm3 = vmmov (!%p708_p7), 0   ;;  %v2703_v1 = vmov (!%p708_p7), 0.0   ;;  %v1173_v45 = vld [vmem:[#allocation4] sm:$0x1] (!%p708_p7)  ;;  %s3482_s15 = sld [smem:[#allocation35_spill]] (!%p708_p7) }
 0x1b9   : > { %711 = sbr.rel (%p708_p7) target bundleno = 755 (0x2f3), region = 88  ;;  %2143 = vmatprep.subr.bf16.mxu0 (!%p708_p7), %v2701_v62  ;;  %2167 = vmatprep.subr.bf16.mxu1 (!%p708_p7), %v2701_v62  ;;  %v2704_v17 = vmov (!%p708_p7), 1.0|1.0   ;;  %v983_v43 = vld [vmem:[#allocation2] sm:$0x1] (!%p708_p7)  ;;  %s3483_s13 = sld [smem:[#allocation36_spill]] (!%p708_p7) }
 0x1ba   : > { %v3064_v63 = vshrl.u32 (!%p708_p7), %v712_v61, 7  ;;  %v922_v0 = vand.u32 (!%p708_p7), 127, %v712_v61  ;;  %1987 = vmatprep.mubr.msk.f32.mxu0 (!%p708_p7), %vm2702_vm3, %v2703_v1  ;;  %2022 = vmatprep.mubr.msk.f32.mxu1 (!%p708_p7), %vm2702_vm3, %v2703_v1  ;;  %v1244_v46 = vld [vmem:[#allocation5] sm:$0x1] (!%p708_p7)  ;;  %s3484_s7 = sld [smem:[#allocation37_spill]] (!%p708_p7)  ;;  %s3485_s29 = sld [smem:[#allocation38_spill]] (!%p708_p7) }
 0x1bb   : > { %v1054_v44 = vld [vmem:[#allocation3] sm:$0x1] (!%p708_p7)  ;;  %s3486_s4 = sld [smem:[#allocation39_spill]] (!%p708_p7)  ;;  %s3487_s8 = sld [smem:[#allocation40_spill]] (!%p708_p7)  ;;  %v1331_v41 = vld [vmem:[#allocation16 + $0x10] sm:$0xff] (!%p708_p7) }
 0x1bc   : > { %v714_v2 = vadd.s32 (!%p708_p7), 8, %v3064_v63  ;;  %v733_v3 = vand.u32 (!%p708_p7), 31, %v3064_v63  ;;  %v3072_v4 = vand.u32 (!%p708_p7), 31, %v922_v0  ;;  %v715_v5 = vadd.s32 (!%p708_p7), 16, %v3064_v63 }
 0x1bd   : > { %v716_v6 = vadd.s32 (!%p708_p7), 24, %v3064_v63  ;;  %v717_v7 = vadd.s32 (!%p708_p7), 32, %v3064_v63  ;;  %v718_v8 = vadd.s32 (!%p708_p7), 40, %v3064_v63  ;;  %v719_v12 = vadd.s32 (!%p708_p7), 48, %v3064_v63 }
 0x1be   : > { %v740_v9 = vand.u32 (!%p708_p7), 31, %v714_v2  ;;  %vm935_vm4 = vcmp.eq.s32.totalorder (!%p708_p7), %v733_v3, %v3072_v4  ;;  %v747_v10 = vand.u32 (!%p708_p7), 31, %v715_v5  ;;  %v720_v13 = vadd.s32 (!%p708_p7), 56, %v3064_v63  ;;  %v1135_v57 = vld [vmem:[%s3482_s15] sm:$0x1] (!%p708_p7)  ;;  %v1139_v2 = vld [vmem:[#allocation13] sm:$0xff] (!%p708_p7) }
 0x1bf   : > { %v754_v11 = vand.u32 (!%p708_p7), 31, %v716_v6  ;;  %v761_v14 = vand.u32 (!%p708_p7), 31, %v717_v7  ;;  %v768_v15 = vand.u32 (!%p708_p7), 31, %v718_v8  ;;  %v775_v19 = vand.u32 (!%p708_p7), 31, %v719_v12  ;;  %v1130_v58 = vld [vmem:[%s3483_s13] sm:$0x1] (!%p708_p7) }
 0x1c0   : > { %vm936_vm5 = vcmp.eq.s32.totalorder %v740_v9, %v3072_v4  ;;  %vm937_vm6 = vcmp.eq.s32.totalorder %v747_v10, %v3072_v4  ;;  %v782_v20 = vand.u32 31, %v720_v13  ;;  %v721_v21 = vadd.s32 64, %v3064_v63  ;;  %v1169_v61 = vld [vmem:[%s3482_s15] sm:$0x1]  ;;  %v1142_v5 = vld [vmem:[#allocation13 + $0x18] sm:$0xff]  ;;  %v1143_v7 = vld [vmem:[#allocation13 + $0x20] sm:$0xff] }
 0x1c1   : > { %vm3083_vm7 = vmpackc.low %vm936_vm5, %vm935_vm4  ;;  %vm938_vm8 = vcmp.eq.s32.totalorder %v754_v11, %v3072_v4  ;;  %vm939_vm10 = vcmp.eq.s32.totalorder %v761_v14, %v3072_v4  ;;  %vm940_vm11 = vcmp.eq.s32.totalorder %v768_v15, %v3072_v4  ;;  %v722_v22 = vadd.s32 72, %v3064_v63  ;;  %v1140_v3 = vld [vmem:[#allocation13 + $0x8] sm:$0xff]  ;;  %v1145_v9 = vld [vmem:[#allocation13 + $0x30] sm:$0xff] }
 0x1c2   : > { %2145 = vmatpush3.bf16.msk.msra.mxu0 %vm3083_vm7, %v2704_v17  ;;  %2169 = vmatpush3.bf16.msk.msra.mxu1 %vm3083_vm7, %v2704_v17  ;;  %vm3095_vm9 = vmpackc.low %vm938_vm8, %vm937_vm6  ;;  %vm941_vm13 = vcmp.eq.s32.totalorder %v775_v19, %v3072_v4  ;;  %vm942_vm14 = vcmp.eq.s32.totalorder %v782_v20, %v3072_v4  ;;  %v789_v24 = vand.u32 31, %v721_v21  ;;  %v723_v26 = vadd.s32 80, %v3064_v63  ;;  %v1144_v8 = vld [vmem:[#allocation13 + $0x28] sm:$0xff]  ;;  %v1146_v11 = vld [vmem:[#allocation13 + $0x38] sm:$0xff] }
 0x1c3   : > { %2146 = vmatprep.subr.bf16.mxu0 %v2701_v62  ;;  %2170 = vmatprep.subr.bf16.mxu1 %v2701_v62  ;;  %vm3111_vm12 = vmpackc.low %vm940_vm11, %vm939_vm10  ;;  %v796_v25 = vand.u32 31, %v722_v22  ;;  %v724_v27 = vadd.s32 88, %v3064_v63  ;;  %v725_v29 = vadd.s32 96, %v3064_v63  ;;  %v726_v30 = vadd.s32 104, %v3064_v63  ;;  %v1320_v33 = vld [vmem:[%s3486_s4] sm:$0x1] }
 0x1c4   : > { %vm3127_vm15 = vmpackc.low %vm942_vm14, %vm941_vm13  ;;  %vm943_vm0 = vcmp.eq.s32.totalorder %v789_v24, %v3072_v4  ;;  %v803_v31 = vand.u32 31, %v723_v26  ;;  %v727_v34 = vadd.s32 112, %v3064_v63  ;;  %v728_v35 = vadd.s32 120, %v3064_v63  ;;  %v1347_v38 = vld [vmem:[%s3485_s29] sm:$0x1] }
 0x1c5   : > { %vm944_vm1 = vcmp.eq.s32.totalorder %v796_v25, %v3072_v4  ;;  %v810_v32 = vand.u32 31, %v724_v27  ;;  %v817_v36 = vand.u32 31, %v725_v29  ;;  %v824_v37 = vand.u32 31, %v726_v30 }
 0x1c6   : > { %2148 = vmatpush3.bf16.msk.msra.mxu0 %vm3095_vm9, %v2704_v17  ;;  %2172 = vmatpush3.bf16.msk.msra.mxu1 %vm3095_vm9, %v2704_v17  ;;  %vm3143_vm2 = vmpackc.low %vm944_vm1, %vm943_vm0  ;;  %vm945_vm4 = vcmp.eq.s32.totalorder %v803_v31, %v3072_v4  ;;  %v831_v39 = vand.u32 31, %v727_v34  ;;  %v838_v40 = vand.u32 31, %v728_v35  ;;  %v1150_v59 = vsub.s32 0, %v3064_v63 }
 0x1c7   : > { %2149 = vmatprep.subr.bf16.mxu0 %v2701_v62  ;;  %2173 = vmatprep.subr.bf16.mxu1 %v2701_v62  ;;  %vm946_vm5 = vcmp.eq.s32.totalorder %v810_v32, %v3072_v4  ;;  %vm947_vm8 = vcmp.eq.s32.totalorder %v817_v36, %v3072_v4  ;;  %vm948_vm10 = vcmp.eq.s32.totalorder %v824_v37, %v3072_v4  ;;  %v1325_v32 = vld [vmem:[%s3485_s29] sm:$0x1] }
 0x1c8   : > { %vm3159_vm6 = vmpackc.low %vm946_vm5, %vm945_vm4  ;;  %vm949_vm13 = vcmp.eq.s32.totalorder %v831_v39, %v3072_v4  ;;  %vm950_vm14 = vcmp.eq.s32.totalorder %v838_v40, %v3072_v4  ;;  %v1141_v4 = vld [vmem:[#allocation13 + $0x10] sm:$0xff]  ;;  %v1324_v37 = vld [vmem:[%s3487_s8] sm:$0x1] }
 0x1c9   : > { %vm3173_vm11 = vmpackc.low %vm948_vm10, %vm947_vm8  ;;  %v1329_v39 = vld [vmem:[#allocation16] sm:$0xff]  ;;  %v1330_v40 = vld [vmem:[#allocation16 + $0x8] sm:$0xff] }
 0x1ca   : > { %2151 = vmatpush3.bf16.msk.msra.mxu0 %vm3111_vm12, %v2704_v17  ;;  %2175 = vmatpush3.bf16.msk.msra.mxu1 %vm3111_vm12, %v2704_v17  ;;  %vm3187_vm0 = vmpackc.low %vm950_vm14, %vm949_vm13 }
 0x1cb   : > { %2152 = vmatprep.subr.bf16.mxu0 %v2701_v62  ;;  %2176 = vmatprep.subr.bf16.mxu1 %v2701_v62 }
 0x1ce   : > { %2154 = vmatpush3.bf16.msk.msra.mxu0 %vm3127_vm15, %v2704_v17  ;;  %2178 = vmatpush3.bf16.msk.msra.mxu1 %vm3127_vm15, %v2704_v17 }
 0x1cf   : > { %2155 = vmatprep.subr.bf16.mxu0 %v2701_v62  ;;  %2179 = vmatprep.subr.bf16.mxu1 %v2701_v62 }
 0x1d2   : > { %2157 = vmatpush3.bf16.msk.msra.mxu0 %vm3143_vm2, %v2704_v17  ;;  %2181 = vmatpush3.bf16.msk.msra.mxu1 %vm3143_vm2, %v2704_v17 }
 0x1d3   : > { %2158 = vmatprep.subr.bf16.mxu0 %v2701_v62  ;;  %2182 = vmatprep.subr.bf16.mxu1 %v2701_v62 }
 0x1d6   : > { %2160 = vmatpush3.bf16.msk.msra.mxu0 %vm3159_vm6, %v2704_v17  ;;  %2184 = vmatpush3.bf16.msk.msra.mxu1 %vm3159_vm6, %v2704_v17 }
 0x1d7   : > { %2161 = vmatprep.subr.bf16.mxu0 %v2701_v62  ;;  %2185 = vmatprep.subr.bf16.mxu1 %v2701_v62 }
 0x1da   : > { %2163 = vmatpush3.bf16.msk.msra.mxu0 %vm3173_vm11, %v2704_v17  ;;  %2187 = vmatpush3.bf16.msk.msra.mxu1 %vm3173_vm11, %v2704_v17 }
 0x1db   : > { %2164 = vmatprep.subr.bf16.mxu0 %v2701_v62  ;;  %2188 = vmatprep.subr.bf16.mxu1 %v2701_v62 }
 0x1de   : > { %2166 = vmatpush3.bf16.msk.msra.mxu0 %vm3187_vm0, %v2704_v17  ;;  %2190 = vmatpush3.bf16.msk.msra.mxu1 %vm3187_vm0, %v2704_v17 }
 0x1df   : > { %2191 = vmatprep.subr.bf16.mxu0 %v2701_v62  ;;  %2215 = vmatprep.subr.bf16.mxu1 %v2701_v62 }
 0x1e1   : > { %1988 = vmatmul.mubr.f32.vlgmr.msra.gmra.mrb[0].mxu0 %v983_v43  ;;  %2023 = vmatmul.mubr.f32.vlgmr.msra.gmra.mrb[0].mxu1 %v1054_v44  ;;  %v1332_v43 = vld [vmem:[#allocation16 + $0x18] sm:$0xff] }
 0x1e2   : > { %2193 = vmatpush3.bf16.msk.msra.mxu0 %vm3083_vm7, %v2704_v17  ;;  %2217 = vmatpush3.bf16.msk.msra.mxu1 %vm3083_vm7, %v2704_v17 }
 0x1e3   : > { %2194 = vmatprep.subr.bf16.mxu0 %v2701_v62  ;;  %2218 = vmatprep.subr.bf16.mxu1 %v2701_v62 }
 0x1e4   : > { %2057 = vmatprep.mubr.msk.f32.mxu0 %vm2702_vm3, %v2703_v1  ;;  %2092 = vmatprep.mubr.msk.f32.mxu1 %vm2702_vm3, %v2703_v1  ;;  %v1134_v1 = vld [vmem:[%s3484_s7] sm:$0x1] }
 0x1e6   : > { %2196 = vmatpush3.bf16.msk.msra.mxu0 %vm3095_vm9, %v2704_v17  ;;  %2220 = vmatpush3.bf16.msk.msra.mxu1 %vm3095_vm9, %v2704_v17 }
 0x1e7   : > { %2197 = vmatprep.subr.bf16.mxu0 %v2701_v62  ;;  %2221 = vmatprep.subr.bf16.mxu1 %v2701_v62 }
 0x1ea   : > { %2199 = vmatpush3.bf16.msk.msra.mxu0 %vm3111_vm12, %v2704_v17  ;;  %2223 = vmatpush3.bf16.msk.msra.mxu1 %vm3111_vm12, %v2704_v17 }
 0x1eb   : > { %2200 = vmatprep.subr.bf16.mxu0 %v2701_v62  ;;  %2224 = vmatprep.subr.bf16.mxu1 %v2701_v62 }
 0x1ee   : > { %2202 = vmatpush3.bf16.msk.msra.mxu0 %vm3127_vm15, %v2704_v17  ;;  %2226 = vmatpush3.bf16.msk.msra.mxu1 %vm3127_vm15, %v2704_v17 }
 0x1ef   : > { %2203 = vmatprep.subr.bf16.mxu0 %v2701_v62  ;;  %2227 = vmatprep.subr.bf16.mxu1 %v2701_v62 }
 0x1f2   : > { %2205 = vmatpush3.bf16.msk.msra.mxu0 %vm3143_vm2, %v2704_v17  ;;  %2229 = vmatpush3.bf16.msk.msra.mxu1 %vm3143_vm2, %v2704_v17 }
 0x1f3   : > { %2206 = vmatprep.subr.bf16.mxu0 %v2701_v62  ;;  %2230 = vmatprep.subr.bf16.mxu1 %v2701_v62 }
 0x1f6   : > { %2208 = vmatpush3.bf16.msk.msra.mxu0 %vm3159_vm6, %v2704_v17  ;;  %2232 = vmatpush3.bf16.msk.msra.mxu1 %vm3159_vm6, %v2704_v17 }
 0x1f7   : > { %2209 = vmatprep.subr.bf16.mxu0 %v2701_v62  ;;  %2233 = vmatprep.subr.bf16.mxu1 %v2701_v62 }
 0x1fa   : > { %2211 = vmatpush3.bf16.msk.msra.mxu0 %vm3173_vm11, %v2704_v17  ;;  %2235 = vmatpush3.bf16.msk.msra.mxu1 %vm3173_vm11, %v2704_v17 }
 0x1fb   : > { %2212 = vmatprep.subr.bf16.mxu0 %v2701_v62  ;;  %2236 = vmatprep.subr.bf16.mxu1 %v2701_v62 }
 0x1fe   : > { %2214 = vmatpush3.bf16.msk.msra.mxu0 %vm3187_vm0, %v2704_v17  ;;  %2238 = vmatpush3.bf16.msk.msra.mxu1 %vm3187_vm0, %v2704_v17 }
 0x201   : > { %2058 = vmatmul.mubr.f32.vlgmr.msra.gmra.mrb[2].mxu0 %v1173_v45  ;;  %2093 = vmatmul.mubr.f32.vlgmr.msra.gmra.mrb[2].mxu1 %v1244_v46 }
 0x2b4   : > { %v1050_v47 = vpop.f32.mrb[0].mxu0  ;;  %v1121_v48 = vpop.f32.mrb[0].mxu1 }
 0x2b5   : > { %v1125_v49 = vmul.f32 0.03125, %v1050_v47  ;;  %v1989_v50 = vpop.f32.mrb[1].mxu0  ;;  %v1126_v51 = vmul.f32 0.03125, %v1121_v48  ;;  %v2024_v52 = vpop.f32.mrb[1].mxu1 }
 0x2b7   : > { %v1127_v53 = vmul.f32 %v1125_v49, %v1125_v49  ;;  %v1136_v62 = vadd.f32 %v1135_v57, %v1125_v49 }
 0x2b9   : > { %v1128_v54 = vsub.f32 %v1126_v51, %v1127_v53 }
 0x2bb   : > { %v1129_v55 = vmax.f32 %v1128_v54, 0.0 }
 0x2bd   : > { %v1131_v56 = vadd.f32 1e-05, %v1129_v55 }
 0x2bf   : > { %2403 = vrsqrt.f32 %v1131_v56 }
 0x2c9   : > { %v2404_v60 = vpop.eup %2403 }
 0x2ca   : > { %v1133_v0 = vmul.f32 %v2404_v60, %v1130_v58 }
 0x2cc   : > { %v1137_v6 = vmul.f32 %v1136_v62, %v1133_v0  ;;  %v1151_v63 = vrot.slane %v1133_v0, %v1150_v59  ;;  %v1170_v10 = vmul.f32 %v1169_v61, %v1133_v0 }
 0x2ce   : > { %v1138_v12 = vsub.f32 %v1134_v1, %v1137_v6  ;;  %v1153_v13 = vmul.f32 %v1151_v63, %v1139_v2  ;;  %v1154_v14 = vmul.f32 %v1151_v63, %v1140_v3  ;;  %v1155_v15 = vmul.f32 %v1151_v63, %v1141_v4 }
 0x2cf   : > { %v1156_v16 = vmul.f32 %v1151_v63, %v1142_v5  ;;  %v1157_v17 = vmul.f32 %v1151_v63, %v1143_v7  ;;  %v1158_v18 = vmul.f32 %v1151_v63, %v1144_v8  ;;  %v1159_v19 = vmul.f32 %v1151_v63, %v1145_v9 }
 0x2d0   : > { %v1160_v20 = vmul.f32 %v1151_v63, %v1146_v11  ;;  %1161 = vst [vmem:[#allocation6] sm:$0xff] %v1153_v13  ;;  %1162 = vst [vmem:[#allocation6 + $0x8] sm:$0xff] %v1154_v14  ;;  %v1171_v21 = vadd.f32 %v1170_v10, %v1138_v12 }
 0x2d1   : > { %1163 = vst [vmem:[#allocation6 + $0x10] sm:$0xff] %v1155_v15  ;;  %1164 = vst [vmem:[#allocation6 + $0x18] sm:$0xff] %v1156_v16 }
 0x2d2   : > { %1165 = vst [vmem:[#allocation6 + $0x20] sm:$0xff] %v1157_v17  ;;  %1166 = vst [vmem:[#allocation6 + $0x28] sm:$0xff] %v1158_v18 }
 0x2d3   : > { %1167 = vst [vmem:[#allocation6 + $0x30] sm:$0xff] %v1159_v19  ;;  %1168 = vst [vmem:[#allocation6 + $0x38] sm:$0xff] %v1160_v20 }
 0x2d4   : > { %1172 = vst [vmem:[#allocation7] sm:$0x1] %v1171_v21  ;;  %v1240_v22 = vpop.f32.mrb[2].mxu0  ;;  %v1311_v23 = vpop.f32.mrb[2].mxu1 }
 0x2d5   : > { %v1315_v24 = vmul.f32 0.015625, %v1240_v22  ;;  %v2059_v25 = vpop.f32.mrb[3].mxu0  ;;  %v1316_v26 = vmul.f32 0.015625, %v1311_v23  ;;  %v2094_v27 = vpop.f32.mrb[3].mxu1 }
 0x2d7   : > { %v1317_v28 = vmul.f32 %v1315_v24, %v1315_v24  ;;  %v1326_v35 = vadd.f32 %v1325_v32, %v1315_v24 }
 0x2d9   : > { %v1318_v29 = vsub.f32 %v1316_v26, %v1317_v28 }
 0x2db   : > { %v1319_v30 = vmax.f32 %v1318_v29, 0.0 }
 0x2dd   : > { %v1321_v31 = vadd.f32 1e-05, %v1319_v30 }
 0x2df   : > { %2405 = vrsqrt.f32 %v1321_v31 }
 0x2e9   : > { %v2406_v34 = vpop.eup %2405 }
 0x2ea   : > { %v1323_v36 = vmul.f32 %v2406_v34, %v1320_v33 }
 0x2ec   : > { %v1327_v42 = vmul.f32 %v1326_v35, %v1323_v36  ;;  %v1337_v44 = vrot.slane %v1323_v36, %v1150_v59  ;;  %v1348_v45 = vmul.f32 %v1347_v38, %v1323_v36 }
 0x2ee   : > { %v1328_v46 = vsub.f32 %v1324_v37, %v1327_v42  ;;  %v1339_v47 = vmul.f32 %v1337_v44, %v1329_v39  ;;  %v1340_v48 = vmul.f32 %v1337_v44, %v1330_v40  ;;  %v1341_v49 = vmul.f32 %v1337_v44, %v1331_v41 }
 0x2ef   : > { %v1342_v50 = vmul.f32 %v1337_v44, %v1332_v43 }
 0x2f0   : > { %1343 = vst [vmem:[#allocation8] sm:$0xff] %v1339_v47  ;;  %1344 = vst [vmem:[#allocation8 + $0x8] sm:$0xff] %v1340_v48  ;;  %v1349_v51 = vadd.f32 %v1348_v45, %v1328_v46 }
 0x2f1   : > { %1345 = vst [vmem:[#allocation8 + $0x10] sm:$0xff] %v1341_v49  ;;  %1346 = vst [vmem:[#allocation8 + $0x18] sm:$0xff] %v1342_v50 }
 0x2f2   : > { %1350 = vst [vmem:[#allocation9] sm:$0x1] %v1349_v51 }
 0x2f3 PF: > { %p1818_p3 = scmp.ne.s32.totalorder %s2677_s24, 1 }
 0x2f4   : > { %v1355_v52 = vld [vmem:[#allocation6] sm:$0xff] (!%p1818_p3)  ;;  %v1356_v53 = vld [vmem:[#allocation6 + $0x8] sm:$0xff] (!%p1818_p3)  ;;  %v1357_v54 = vld [vmem:[#allocation6 + $0x10] sm:$0xff] (!%p1818_p3)  ;;  %v2705_v55 = vmov (!%p1818_p3), 0.0|0.0   ;;  %vm2706_vm3 = vmmov (!%p1818_p3), 0   ;;  %v2707_v62 = vmov (!%p1818_p3), 0.0  }
 0x2f5   : > { %1353 = sbr.rel (%p1818_p3) target bundleno = 989 (0x3dd), region = 92  ;;  %2239 = vmatprep.subr.bf16.mxu0 (!%p1818_p3), %v2705_v55  ;;  %v2240_v56 = vpack.c.bf16 (!%p1818_p3), %v1356_v53, %v1355_v52  ;;  %v1358_v57 = vld [vmem:[#allocation6 + $0x18] sm:$0xff] (!%p1818_p3)  ;;  %2251 = vmatprep.subr.bf16.mxu1 (!%p1818_p3), %v2705_v55  ;;  %v1359_v2 = vld [vmem:[#allocation6 + $0x20] sm:$0xff] (!%p1818_p3)  ;;  %v1360_v3 = vld [vmem:[#allocation6 + $0x28] sm:$0xff] (!%p1818_p3)  ;;  %vm1457_vm7 = vcmask (!%p1818_p3), 261120   ;;  %vm1370_vm9 = vcmask (!%p1818_p3), 523264  }
 0x2f6   : > { %2122 = vmatprep.mubr.msk.f32.mxu1 (!%p1818_p3), %vm2706_vm3, %v2707_v62  ;;  %2111 = vmatprep.mubr.msk.f32.mxu0 (!%p1818_p3), %vm2706_vm3, %v2707_v62  ;;  %v2243_v0 = vpack.c.bf16 (!%p1818_p3), %v1358_v57, %v1357_v54  ;;  %v2246_v5 = vpack.c.bf16 (!%p1818_p3), %v1360_v3, %v1359_v2  ;;  %v1361_v6 = vld [vmem:[#allocation6 + $0x30] sm:$0xff] (!%p1818_p3)  ;;  %v1362_v7 = vld [vmem:[#allocation6 + $0x38] sm:$0xff] (!%p1818_p3)  ;;  %v1819_v14 = vld [vmem:[#allocation7] ss:$0 sm:$0xff] (!%p1818_p3) }
 0x2f7   : > { %v1446_v58 = vld [vmem:[#allocation8] sm:$0xff] (!%p1818_p3)  ;;  %v1447_v59 = vld [vmem:[#allocation8 + $0x8] sm:$0xff] (!%p1818_p3)  ;;  %2241 = vmatpush3.bf16.msra.mxu0 (!%p1818_p3), %v2240_v56  ;;  %v2249_v9 = vpack.c.bf16 (!%p1818_p3), %v1362_v7, %v1361_v6 }
 0x2f8   : > { %v2252_v60 = vpack.c.bf16 (!%p1818_p3), %v1447_v59, %v1446_v58  ;;  %v1448_v61 = vld [vmem:[#allocation8 + $0x10] sm:$0xff] (!%p1818_p3)  ;;  %v1449_v1 = vld [vmem:[#allocation8 + $0x18] sm:$0xff] (!%p1818_p3)  ;;  %2242 = vmatprep.subr.bf16.mxu0 (!%p1818_p3), %v2705_v55 }
 0x2f9   : > { %v2255_v4 = vpack.c.bf16 (!%p1818_p3), %v1449_v1, %v1448_v61  ;;  %v1445_v8 = vld [vmem:[%s439_s14] sm:$0xff] (!%p1818_p3)  ;;  %v1354_v63 = vld [vmem:[%s426_s20] sm:$0xff] (!%p1818_p3) }
 0x2fa   : > { %2253 = vmatpush3.bf16.msra.mxu1 (!%p1818_p3), %v2252_v60  ;;  %v1821_v10 = vld [vmem:[#allocation9] ss:$0 sm:$0xff] (!%p1818_p3) }
 0x2fb   : > { %2254 = vmatprep.subr.bf16.mxu1 (!%p1818_p3), %v2705_v55  ;;  %2244 = vmatpush3.bf16.msra.mxu0 (!%p1818_p3), %v2243_v0 }
 0x2fc   : > { %2245 = vmatprep.subr.bf16.mxu0 %v2705_v55 }
 0x2fe   : > { %2256 = vmatpush3.bf16.msra.mxu1 %v2255_v4 }
 0x2ff   : > { %2247 = vmatpush3.bf16.msra.mxu0 %v2246_v5 }
 0x300   : > { %2248 = vmatprep.subr.bf16.mxu0 %v2705_v55 }
 0x301   : > { %2123 = vmatmul.mubr.msk.f32.vlgmr.msra.gmra.mrb[0].mxu1 %vm1457_vm7, %v1445_v8 }
 0x303   : > { %2250 = vmatpush3.bf16.msra.mxu0 %v2249_v9 }
 0x306   : > { %2112 = vmatmul.mubr.msk.f32.vlgmr.msra.gmra.mrb[0].mxu0 %vm1370_vm9, %v1354_v63 }
 0x3d4   : > { %v1527_v11 = vpop.f32.mrb[0].mxu1 }
 0x3d5   : > { %v1528_v12 = vadd.f32 %v1821_v10, %v1527_v11  ;;  %v2124_v13 = vpop.f32.mrb[1].mxu1 }
 0x3d7   : > { %1531 = vst [vmem:[%s3052_s17] sm:$0xff] %v1528_v12 }
 0x3d9   : > { %v1440_v15 = vpop.f32.mrb[0].mxu0 }
 0x3da   : > { %v1441_v16 = vadd.f32 %v1819_v14, %v1440_v15  ;;  %v2113_v17 = vpop.f32.mrb[1].mxu0 }
 0x3dc   : > { %1444 = vst [vmem:[%s3050_s30] sm:$0xff] %v1441_v16 }
 0x3dd PF: > { %s3488_s14 = sld [smem:[#allocation27_spill]]  ;;  %s3489_s7 = sld [smem:[#allocation29_spill]] }
 0x3de   : > { %s1552_s20 = sshll.u32 %s3050_s30, 4  ;;  %s3490_s16 = sld [smem:[#allocation41_spill]]  ;;  %s3301_s20 = int_to_ptr.vmem [resolvable:$true] %s1552_s20 }
 0x3df   : > { %s3491_s8 = sld [smem:[#allocation42_spill]]  ;;  %s1533_s11 = scalar_lea.sflag [#allocation12], %s3043_s26 }
 0x3e0   : > { %s2523_s0 = scalar_lea.vmem %s3301_s20, 128 }
 0x3e1   : > { %p2524_p5 = scmp.ne.s32.totalorder %s3301_s20, %s2523_s0 }
 0x3e3   : > { %s1545_s3 = smul.u32 %s3488_s14, %s2677_s24  ;;  %p3492_p0 = scmp.ne.s32.totalorder %s3489_s7, 0 }
 0x3e4   : > { %s2708_s24 = smov [#allocation17]  }
 0x3e5   : > { %s1825_s12 = sshll.u32 %s1545_s3, 7  ;;  %p2525_p8 = pnand %p2524_p5, %p3492_p0 }
 0x3e6   : > { %s3306_s4 = scalar_lea.hbm %s3490_s16, %s1825_s12  ;;  %s3311_s1 = scalar_lea.hbm %s3491_s8, %s1825_s12 }
 0x3e7   : > { %p2526_p11 = pneg %p2525_p8  ;;  %s2527_s30 = sshll.u32 %s2708_s24, 4  ;;  %s2528_s30 = int_to_ptr.vmem [resolvable:$false] %s2527_s30 }
 0x3e8   : > { %s2529_s14 = scalar_lea.vmem %s2528_s30, 256  ;;  %p2530_p12 = scmp.lt.s32.totalorder %s3301_s20, %s2528_s30 }
 0x3e9   : > { %p2531_p4 = scmp.lt.s32.totalorder %s2529_s14, %s2523_s0 }
 0x3eb   : > { %p2532_p6 = por %p2531_p4, %p2530_p12 }
 0x3ed   : > { %p2533_p13 = pnand %p2532_p6, %p2526_p11 }
 0x3ef   : > { %2536 = shalt.err (!%p2533_p13)
}
 0x3f0   : > { %s2537_s3 = scalar_lea.hbm %s3306_s4, 128  ;;  %s2541_s23 = scalar_lea.hbm %s3490_s16, 512 }
 0x3f1   : > { %p2538_p10 = scmp.ne.s32.totalorder %s3306_s4, %s2537_s3  ;;  %p2542_p9 = scmp.lt.u32.totalorder %s3306_s4, %s3490_s16 }
 0x3f2   : > { %p2543_p7 = scmp.lt.u32.totalorder %s2541_s23, %s2537_s3  ;;  %p2545_p5 = scmp.lt.u32.totalorder %s2537_s3, %s3306_s4 }
 0x3f3   : > { %p2539_p1 = pnand %p2538_p10, %p3492_p0 }
 0x3f4   : > { %p2544_p3 = por %p2543_p7, %p2542_p9 }
 0x3f5   : > { %p2540_p2 = pneg %p2539_p1 }
 0x3f6   : > { %p2546_p8 = por %p2545_p5, %p2544_p3 }
 0x3f8   : > { %p2547_p11 = pnand %p2546_p8, %p2540_p2 }
 0x3fa   : > { %2550 = shalt.err (!%p2547_p11)
}
 0x3fb   : > { %2269 = dma.vmem_to_hbm [thread:$0]  (%p3492_p0), %s3301_s20, 128, %s3306_s4, %s1533_s11  }
 0x3fc   : > { %s1566_s0 = sshll.u32 %s3052_s17, 4  ;;  %s1538_s24 = scalar_lea.sflag [#allocation19], %s3043_s26  ;;  %s1567_s0 = int_to_ptr.vmem [resolvable:$true] %s1566_s0 }
 0x3fd   : > { %s2551_s30 = scalar_lea.vmem %s1567_s0, 128  ;;  %s2709_s14 = smov [#allocation18]  }
 0x3fe   : > { %p2552_p12 = scmp.ne.s32.totalorder %s1567_s0, %s2551_s30  ;;  %s2555_s3 = sshll.u32 %s2709_s14, 4  ;;  %s2556_s3 = int_to_ptr.vmem [resolvable:$false] %s2555_s3 }
 0x3ff   : > { %s2557_s12 = scalar_lea.vmem %s2556_s3, 256  ;;  %p2558_p13 = scmp.lt.s32.totalorder %s1567_s0, %s2556_s3 }
 0x400   : > { %p2553_p4 = pnand %p2552_p12, %p3492_p0  ;;  %p2559_p10 = scmp.lt.s32.totalorder %s2557_s12, %s2551_s30 }
 0x402   : > { %p2554_p6 = pneg %p2553_p4  ;;  %p2560_p1 = por %p2559_p10, %p2558_p13 }
 0x404   : > { %p2561_p2 = pnand %p2560_p1, %p2554_p6 }
 0x406   : > { %2564 = shalt.err (!%p2561_p2)
}
 0x407   : > { %s2565_s26 = scalar_lea.hbm %s3311_s1, 128  ;;  %s2569_s4 = scalar_lea.hbm %s3491_s8, 512 }
 0x408   : > { %p2566_p9 = scmp.ne.s32.totalorder %s3311_s1, %s2565_s26  ;;  %p2570_p5 = scmp.lt.u32.totalorder %s3311_s1, %s3491_s8 }
 0x409   : > { %p2571_p8 = scmp.lt.u32.totalorder %s2569_s4, %s2565_s26  ;;  %p2573_p12 = scmp.lt.u32.totalorder %s2565_s26, %s3311_s1 }
 0x40a   : > { %p2567_p7 = pnand %p2566_p9, %p3492_p0 }
 0x40b   : > { %p2572_p11 = por %p2571_p8, %p2570_p5 }
 0x40c   : > { %p2568_p3 = pneg %p2567_p7 }
 0x40d   : > { %p2574_p4 = por %p2573_p12, %p2572_p11 }
 0x40f   : > { %p2575_p6 = pnand %p2574_p4, %p2568_p3 }
 0x411   : > { %2578 = shalt.err (!%p2575_p6)
}
 0x412   : > { %2270 = dma.vmem_to_hbm [thread:$0]  (%p3492_p0), %s1567_s0, 128, %s3311_s1, %s1538_s24  }
 0x413 PF: > { %s3493_s23 = sld [smem:[#allocation26_spill]]  ;;  %s3494_s13 = sld [smem:[#allocation30_spill]] }
 0x414   : > { %p2299_p13 = scmp.ge.s32.totalorder %s2689_s27, 2 }
 0x419   : > { %s1578_s9 = sand.u32 1, %s3493_s23   ;;  %p3495_p10 = scmp.ne.s32.totalorder %s3494_s13, 0 }
 0x41a   : > { %s1579_s30 = scalar_lea.sflag [#allocation12], %s1578_s9 }
 0x41b   : > { %p2288_p1 = pnand %p2299_p13, %p3495_p10 }
 0x41d   : > { %2640 = dma.done.wait (!%p2288_p1), %s1579_s30, 128  }
 0x41e   : > { %2642 = vsyncadd (!%p2288_p1), %s1579_s30, 4294967168  ;;  %s1588_s14 = scalar_lea.sflag [#allocation19], %s1578_s9 }
 0x41f   : > { %2644 = dma.done.wait (!%p2288_p1), %s1588_s14, 128  }
 0x420   : > { %2646 = vsyncadd (!%p2288_p1), %s1588_s14, 4294967168  ;;  %s32_s27 = sadd.s32 1, %s2689_s27   ;;  %s3496_s24 = sld [smem:[#allocation28_spill]] }
 0x421   : > { %p29_p2 = scmp.ge.s32.totalorder %s32_s27, 10   ;;  %s3497_s7 = sld [smem:[#allocation31_spill]] }
 0x422   : > { %s3498_s26 = sld [smem:[#allocation32_spill]]  ;;  %s3499_s17 = smov %s2653_s18 }
 0x423   : > { %s3500_s18 = smov %s2657_s19  ;;  %s3501_s19 = smov %s2919_s2 }
 0x424   : > { %s3502_s20 = smov %s2665_s21  ;;  %s3503_s21 = smov %s2669_s22 }
 0x425   : > { %s3504_s22 = smov %s2908_s10  ;;  %s3505_s23 = smov %s2681_s25 }
 0x426   :  { %31 = sbr.rel (!%p29_p2) target bundleno = 23 (0x17), region = 157 }
 0x427   : > { %s3506_s25 = smov %s3497_s7 }
 0x42d   :  { %1593 = vsyncpa [#allocation11], 1 }
 0x42e   :  { %1595 = vsyncpa [#allocation11 + $0x1], 1 }
 0x42f   :  { %1596 = vsyncpa [#allocation14], 1 }
 0x430   :  { %1597 = vsyncpa [#allocation12], 1 }
 0x431   :  { %1599 = vsyncpa [#allocation12 + $0x1], 1 }
 0x432   :  { %1600 = vsyncpa [#allocation19], 1 }
 0x433   :  { %1602 = vsyncpa [#allocation19 + $0x1], 1 }

</bundles_post_ra>
